<compile_context>
chip_gen: v7x
topology: tpu7x:2x2x1
jax: 0.10.0
libtpu: 0.0.40
codegen_flags: <defaults>
</compile_context>

<pallas_src>
import functools

import jax
import jax.numpy as jnp
from jax.experimental import pallas as pl
from jax.experimental.pallas import tpu as pltpu


# ----------------------------- Pallas kernel ------------------------------ #

def _logmel_l1_kernel(frames_ref, dft_ref, mel_ref, out_ref, acc_ref, *,
                      eps, tn):
    i = pl.program_id(1)                       # inner (reduction) grid axis

    @pl.when(i == 0)
    def _():
        acc_ref[...] = jnp.zeros_like(acc_ref)

    # Windowed real-DFT of the stacked [input ; target] frame tile: one bf16
    # MXU matmul with f32 accumulation.  Columns [0:f_pad) = Re, [f_pad:) = Im.
    ri = jnp.dot(frames_ref[...], dft_ref[...],
                 preferred_element_type=jnp.float32)        # (2*tn, 2*f_pad)
    f_pad = ri.shape[-1] // 2
    power = ri[:, :f_pad] ** 2 + ri[:, f_pad:] ** 2         # (2*tn, f_pad) f32

    # Mel projection of the *f32* power via a bf16 hi/lo split: two small bf16
    # matmuls (~12% of the DFT FLOPs) instead of a lossy single bf16 cast.
    p_hi = power.astype(jnp.bfloat16)
    p_lo = (power - p_hi.astype(jnp.float32)).astype(jnp.bfloat16)
    mel = (jnp.dot(p_hi, mel_ref[...], preferred_element_type=jnp.float32)
           + jnp.dot(p_lo, mel_ref[...], preferred_element_type=jnp.float32))
    lm = jnp.log(jnp.maximum(mel, eps))                     # (2*tn, m_pad) f32

    diff = jnp.abs(lm[:tn] - lm[tn:])                       # (tn, m_pad)
    m_pad = diff.shape[-1]
    # Fold rows 8-at-a-time into the lane-wide f32 accumulator (tile-aligned
    # reshape, cheap VPU adds); the final collapse happens once, on the host.
    acc_ref[...] += diff.reshape(tn // 8, 8, m_pad).sum(axis=0)

    @pl.when(i == pl.num_programs(1) - 1)
    def _():
        out_ref[0] = acc_ref[...]              # per-core partial-sum slab


# ------------------------------ host helpers ------------------------------ #

def _hann_window(n_fft):
    n = jnp.arange(n_fft, dtype=jnp.float32)
    return 0.5 - 0.5 * jnp.cos(2.0 * jnp.pi * n / n_fft)   # torch periodic hann


def _dft_matrices(n_fft, n_keep, n_pad):
    """cos/sin DFT matrices for bins k = 0 .. n_keep-1, zero-padded to n_pad."""
    n = jnp.arange(n_fft, dtype=jnp.float32)[:, None]
    k = jnp.arange(n_keep, dtype=jnp.float32)[None, :]
    ang = -2.0 * jnp.pi * n * k / n_fft
    pad = ((0, 0), (0, n_pad - n_keep))
    return jnp.pad(jnp.cos(ang), pad), jnp.pad(jnp.sin(ang), pad)


def _mel_fbanks(n_freqs, sr, n_mels, n_keep, n_rows_pad, n_cols_pad):
    # torchaudio melscale_fbanks: mel_scale="htk", norm=None, f_min=0, f_max=sr//2
    f_max = sr // 2

    def hz_to_mel(f):
        return 2595.0 * jnp.log10(1.0 + f / 700.0)

    def mel_to_hz(m):
        return 700.0 * (10.0 ** (m / 2595.0) - 1.0)

    all_freqs = jnp.linspace(0.0, f_max, n_freqs)
    m_pts = jnp.linspace(hz_to_mel(0.0), hz_to_mel(f_max), n_mels + 2)
    f_pts = mel_to_hz(m_pts)
    f_diff = f_pts[1:] - f_pts[:-1]                        # (n_mels+1,)
    slopes = f_pts[None, :] - all_freqs[:, None]           # (n_freqs, n_mels+2)
    down = (-slopes[:, :-2]) / f_diff[:-1]
    up = slopes[:, 2:] / f_diff[1:]
    fb = jnp.maximum(0.0, jnp.minimum(down, up))            # (n_freqs, n_mels)
    # n_keep = n_freqs-1 drops the Nyquist row, which is exactly 0 (HTK,
    # f_max = sr//2): the right edge of the last triangle sits at sr//2.
    fb = fb[:n_keep]
    fb = jnp.pad(fb, ((0, n_rows_pad - n_keep), (0, n_cols_pad - n_mels)))
    return fb.astype(jnp.float32)


def _frame_signal(x, n_fft, hop_len):
    # center=True, pad_mode="reflect" (torch.stft semantics)
    pad = n_fft // 2
    xp = jnp.pad(x, ((0, 0), (pad, pad)), mode="reflect")
    n_frames = 1 + x.shape[-1] // hop_len
    idx = jnp.arange(n_frames)[:, None] * hop_len + jnp.arange(n_fft)[None, :]
    frames = xp[:, idx]                                     # (B, n_frames, n_fft)
    return frames.reshape(-1, n_fft), n_frames


def _round_up(x, m):
    return ((x + m - 1) // m) * m


# ------------------------------ public entry ------------------------------ #

def log_mel_loss(inp, tgt, *, sr=44100.0, n_fft=1024, hop_len=256,
                 n_mels=256, eps=1e-7, frames_per_tile=512):
    """L1 loss between log-mel-spectrograms of `inp` and `tgt` (shape [B, T])."""
    assert inp.shape == tgt.shape and inp.ndim == 2
    B = inp.shape[0]
    n_freqs = n_fft // 2 + 1
    f_half = n_fft // 2          # Nyquist bin dropped (its mel row is exactly 0)
    f_pad = _round_up(f_half, 128)
    m_pad = _round_up(n_mels, 128)

    # bf16 before framing: halves the gather output and the framed HBM traffic.
    frames_in, n_frames = _frame_signal(inp.astype(jnp.bfloat16), n_fft, hop_len)
    frames_tg, _ = _frame_signal(tgt.astype(jnp.bfloat16), n_fft, hop_len)
    n_rows = frames_in.shape[0]                             # B * n_frames

    # ---- tile / grid geometry -------------------------------------------- #
    tn = _round_up(min(frames_per_tile, _round_up(n_rows, 8)), 8)
    n_blocks = -(-n_rows // tn)
    n_split = 2 if n_blocks >= 2 else 1                     # 2-TC split (v7x)
    blocks_per_core = -(-n_blocks // n_split)
    n_blocks_tot = n_split * blocks_per_core
    row_pad = n_blocks_tot * tn - n_rows

    # Zero-padded rows give identical log-mel for in/tgt -> contribute 0 to L1.
    frames_in = jnp.pad(frames_in, ((0, row_pad), (0, 0)))
    frames_tg = jnp.pad(frames_tg, ((0, row_pad), (0, 0)))
    # Stack in/tgt along M per block: one (2*tn, n_fft) MXU operand per step.
    frames = jnp.concatenate(
        [frames_in.reshape(n_blocks_tot, tn, n_fft),
         frames_tg.reshape(n_blocks_tot, tn, n_fft)], axis=1,
    ).reshape(n_blocks_tot * 2 * tn, n_fft)

    # Window folded into the DFT; real|imag concatenated -> one bf16 matmul.
    window = _hann_window(n_fft)[:, None]                   # (n_fft, 1)
    dre, dim = _dft_matrices(n_fft, f_half, f_pad)          # (n_fft, f_pad)
    dft = jnp.concatenate([window * dre, window * dim],
                          axis=1).astype(jnp.bfloat16)      # (n_fft, 2*f_pad)
    mel_fb = _mel_fbanks(n_freqs, sr, n_mels, f_half,
                         f_pad, m_pad).astype(jnp.bfloat16)  # (f_pad, m_pad)

    kernel = functools.partial(_logmel_l1_kernel, eps=float(eps), tn=tn)

    def _run(single_buffer_weights):
        const_kw = ({"pipeline_mode": pl.Buffered(1)}
                    if single_buffer_weights else {})
        in_specs = [
            pl.BlockSpec((2 * tn, n_fft),
                         lambda c, i: (c * blocks_per_core + i, 0)),
            pl.BlockSpec((n_fft, 2 * f_pad), lambda c, i: (0, 0), **const_kw),
            pl.BlockSpec((f_pad, m_pad), lambda c, i: (0, 0), **const_kw),
        ]
        return pl.pallas_call(
            kernel,
            out_shape=jax.ShapeDtypeStruct((n_split, 8, m_pad), jnp.float32),
            grid_spec=pltpu.PrefetchScalarGridSpec(
                num_scalar_prefetch=0,
                grid=(n_split, blocks_per_core),
                in_specs=in_specs,
                out_specs=pl.BlockSpec((1, 8, m_pad), lambda c, i: (c, 0, 0)),
                scratch_shapes=[pltpu.VMEM((8, m_pad), jnp.float32)],
            ),
            compiler_params=pltpu.CompilerParams(
                # TODO(synk): on v7x, pltpu.CORE_PARALLEL on the first axis is
                # the guaranteed 2-TC split; "parallel" is kept because it is
                # valid (and the documented megacore mechanism) on every gen.
                dimension_semantics=("parallel", "arbitrary"),
                vmem_limit_bytes=40 * 1024 * 1024),
        )(frames, dft, mel_fb)

    try:
        partial_sums = _run(True)
    except Exception:          # jax without BlockSpec pipeline_mode / Buffered(1)
        partial_sums = _run(False)

    # L1Loss(reduction="mean") over the (B, n_mels, n_frames) spectrogram.
    n_elems = B * n_mels * n_frames
    return jnp.sum(partial_sums) / jnp.float32(n_elems)


# ----------------------------- pure-JAX reference -------------------------- #

def _log_mel_loss_ref(inp, tgt, *, sr, n_fft, hop_len, n_mels, eps):
    n_freqs = n_fft // 2 + 1
    window = _hann_window(n_fft)[None, :]
    dre, dim = _dft_matrices(n_fft, n_freqs, n_freqs)       # full 513-bin DFT
    fb = _mel_fbanks(n_freqs, sr, n_mels, n_freqs, n_freqs, n_mels)
    hi = jax.lax.Precision.HIGHEST

    def logmel(x):
        frames, _ = _frame_signal(x.astype(jnp.float32), n_fft, hop_len)
        xw = frames * window
        re = jnp.dot(xw, dre, precision=hi)
        im = jnp.dot(xw, dim, precision=hi)
        mel = jnp.dot(re * re + im * im, fb, precision=hi)
        return jnp.log(jnp.maximum(mel, eps))

    return jnp.mean(jnp.abs(logmel(inp) - logmel(tgt)))


# ----------------------------------- main ---------------------------------- #

if __name__ == "__main__":
    # Small, module-consistent configuration (init args of LogMelLoss).
    sr, n_fft, hop_len, n_mels, eps = 16000.0, 256, 64, 64, 1e-7
    B, T = 2, 1024

    key = jax.random.PRNGKey(0)
    k1, k2 = jax.random.split(key)
    inp = jax.random.normal(k1, (B, T), dtype=jnp.float32)
    tgt = jax.random.normal(k2, (B, T), dtype=jnp.float32)

    loss = log_mel_loss(inp, tgt, sr=sr, n_fft=n_fft, hop_len=hop_len,
                        n_mels=n_mels, eps=eps)
    loss = jax.block_until_ready(loss)

    ref = _log_mel_loss_ref(inp, tgt, sr=sr, n_fft=n_fft, hop_len=hop_len,
                            n_mels=n_mels, eps=eps)
    # bf16 frames/DFT on the MXU (f32 accumulation, f32 power into the mel
    # matmul) vs the full-precision f32 reference.
    assert jnp.allclose(loss, ref, rtol=2e-3, atol=2e-3), (loss, ref)

    print("KERNEL_OK")
</pallas_src>

<mosaic_0001>
module attributes {stable_mosaic.version = 11 : i64} {
  func.func @_logmel_l1_kernel(%arg0: i32, %arg1: i32, %arg2: memref<80x256xbf16, #tpu.memory_space<vmem>>, %arg3: memref<256x256xbf16, #tpu.memory_space<vmem>>, %arg4: memref<128x128xbf16, #tpu.memory_space<vmem>>, %arg5: memref<1x8x128xf32, #tpu.memory_space<vmem>>, %arg6: memref<8x128xf32, #tpu.memory_space<vmem>>) attributes {dimension_semantics = [#tpu.dimension_semantics<parallel>, #tpu.dimension_semantics<arbitrary>], iteration_bounds = array<i64: 1, 1>, scalar_prefetch = 0 : i64, scratch_operands = 1 : i64, tpu.core_type = #tpu.core_type<tc>, window_params = [{transform_indices = @transform_0, window_bounds = array<i64: 80, 256>}, {pipeline_mode = #tpu.pipeline_mode<synchronous>, transform_indices = @transform_1, window_bounds = array<i64: 256, 256>}, {pipeline_mode = #tpu.pipeline_mode<synchronous>, transform_indices = @transform_2, window_bounds = array<i64: 128, 128>}, {transform_indices = @transform_3, window_bounds = array<i64: 1, 8, 128>}]} {
    %c0_i32 = arith.constant 0 : i32
    %0 = arith.cmpi eq, %arg1, %c0_i32 : i32
    %1 = arith.extui %0 : i1 to i32
    %c0_i32_0 = arith.constant 0 : i32
    %2 = arith.cmpi ne, %1, %c0_i32_0 : i32
    scf.if %2 {
      %cst_18 = arith.constant 0.000000e+00 : f32
      %35 = vector.broadcast %cst_18 : f32 to vector<8x128xf32>
      %c0_19 = arith.constant 0 : index
      %c0_20 = arith.constant 0 : index
      %36 = vector.load %arg6[%c0_19, %c0_20] : memref<8x128xf32, #tpu.memory_space<vmem>>, vector<8x128xf32>
      tpu.vector_store %arg6[%c0_19, %c0_20], %35 {strides = array<i32>} : memref<8x128xf32, #tpu.memory_space<vmem>>, vector<8x128xf32>,
    } else {
    }
    %c0 = arith.constant 0 : index
    %c0_1 = arith.constant 0 : index
    %3 = vector.load %arg2[%c0, %c0_1] : memref<80x256xbf16, #tpu.memory_space<vmem>>, vector<80x256xbf16>
    %c0_2 = arith.constant 0 : index
    %c0_3 = arith.constant 0 : index
    %4 = vector.load %arg3[%c0_2, %c0_3] : memref<256x256xbf16, #tpu.memory_space<vmem>>, vector<256x256xbf16>
    %cst = arith.constant dense<0.000000e+00> : vector<80x256xf32>
    %5 = tpu.matmul %3, %4, %cst {dimension_numbers = #tpu.dot_dimension_numbers<[1], [0], [0], [1], [0, 0, 1, 1], [], []>} : vector<80x256xbf16>, vector<256x256xbf16>, vector<80x256xf32> -> vector<80x256xf32>
    %6 = vector.extract_strided_slice %5 {offsets = [0, 0], sizes = [80, 128], strides = [1, 1]} : vector<80x256xf32> to vector<80x128xf32>
    %7 = arith.mulf %6, %6 : vector<80x128xf32>
    %8 = vector.extract_strided_slice %5 {offsets = [0, 128], sizes = [80, 128], strides = [1, 1]} : vector<80x256xf32> to vector<80x128xf32>
    %9 = arith.mulf %8, %8 : vector<80x128xf32>
    %10 = arith.addf %7, %9 : vector<80x128xf32>
    %11 = arith.truncf %10 : vector<80x128xf32> to vector<80x128xbf16>
    %12 = arith.extf %11 : vector<80x128xbf16> to vector<80x128xf32>
    %13 = arith.subf %10, %12 : vector<80x128xf32>
    %14 = arith.truncf %13 : vector<80x128xf32> to vector<80x128xbf16>
    %c0_4 = arith.constant 0 : index
    %c0_5 = arith.constant 0 : index
    %15 = vector.load %arg4[%c0_4, %c0_5] : memref<128x128xbf16, #tpu.memory_space<vmem>>, vector<128x128xbf16>
    %cst_6 = arith.constant dense<0.000000e+00> : vector<80x128xf32>
    %16 = tpu.matmul %11, %15, %cst_6 {dimension_numbers = #tpu.dot_dimension_numbers<[1], [0], [0], [1], [0, 0, 1, 1], [], []>} : vector<80x128xbf16>, vector<128x128xbf16>, vector<80x128xf32> -> vector<80x128xf32>
    %c0_7 = arith.constant 0 : index
    %c0_8 = arith.constant 0 : index
    %17 = vector.load %arg4[%c0_7, %c0_8] : memref<128x128xbf16, #tpu.memory_space<vmem>>, vector<128x128xbf16>
    %cst_9 = arith.constant dense<0.000000e+00> : vector<80x128xf32>
    %18 = tpu.matmul %14, %17, %cst_9 {dimension_numbers = #tpu.dot_dimension_numbers<[1], [0], [0], [1], [0, 0, 1, 1], [], []>} : vector<80x128xbf16>, vector<128x128xbf16>, vector<80x128xf32> -> vector<80x128xf32>
    %19 = arith.addf %16, %18 : vector<80x128xf32>
    %cst_10 = arith.constant 1.000000e-07 : f32
    %20 = vector.broadcast %cst_10 : f32 to vector<80x128xf32>
    %21 = arith.maximumf %19, %20 : vector<80x128xf32>
    %22 = math.log %21 : vector<80x128xf32>
    %23 = vector.extract_strided_slice %22 {offsets = [0, 0], sizes = [40, 128], strides = [1, 1]} : vector<80x128xf32> to vector<40x128xf32>
    %24 = vector.extract_strided_slice %22 {offsets = [40, 0], sizes = [40, 128], strides = [1, 1]} : vector<80x128xf32> to vector<40x128xf32>
    %25 = arith.subf %23, %24 : vector<40x128xf32>
    %26 = math.absf %25 : vector<40x128xf32>
    %c0_11 = arith.constant 0 : index
    %c0_12 = arith.constant 0 : index
    %27 = vector.load %arg6[%c0_11, %c0_12] : memref<8x128xf32, #tpu.memory_space<vmem>>, vector<8x128xf32>
    %28 = vector.shape_cast %26 : vector<40x128xf32> to vector<5x8x128xf32>
    %cst_13 = arith.constant dense<0.000000e+00> : vector<8x128xf32>
    %29 = vector.multi_reduction <add>, %28, %cst_13 [0] : vector<5x8x128xf32> to vector<8x128xf32>
    %30 = arith.addf %27, %29 : vector<8x128xf32>
    %c0_14 = arith.constant 0 : index
    %c0_15 = arith.constant 0 : index
    %31 = vector.load %arg6[%c0_14, %c0_15] : memref<8x128xf32, #tpu.memory_space<vmem>>, vector<8x128xf32>
    tpu.vector_store %arg6[%c0_14, %c0_15], %30 {strides = array<i32>} : memref<8x128xf32, #tpu.memory_space<vmem>>, vector<8x128xf32>,
    %c0_i32_16 = arith.constant 0 : i32
    %32 = arith.cmpi eq, %arg1, %c0_i32_16 : i32
    %33 = arith.extui %32 : i1 to i32
    %c0_i32_17 = arith.constant 0 : i32
    %34 = arith.cmpi ne, %33, %c0_i32_17 : i32
    scf.if %34 {
      %c0_18 = arith.constant 0 : index
      %c0_19 = arith.constant 0 : index
      %35 = vector.load %arg6[%c0_18, %c0_19] : memref<8x128xf32, #tpu.memory_space<vmem>>, vector<8x128xf32>
      %c0_20 = arith.constant 0 : index
      %c0_21 = arith.constant 0 : index
      %c0_22 = arith.constant 0 : index
      %36 = vector.load %arg5[%c0_20, %c0_21, %c0_22] : memref<1x8x128xf32, #tpu.memory_space<vmem>>, vector<1x8x128xf32>
      %37 = vector.shape_cast %36 : vector<1x8x128xf32> to vector<8x128xf32>
      %38 = vector.shape_cast %35 : vector<8x128xf32> to vector<1x8x128xf32>
      tpu.vector_store %arg5[%c0_20, %c0_21, %c0_22], %38 {strides = array<i32>} : memref<1x8x128xf32, #tpu.memory_space<vmem>>, vector<1x8x128xf32>,
    } else {
    }
    return
  }
  func.func @transform_0(%arg0: i32, %arg1: i32) -> (i32, i32) {
    %c1_i32 = arith.constant 1 : i32
    %0 = arith.muli %arg0, %c1_i32 : i32
    %1 = arith.addi %0, %arg1 : i32
    %c0_i32 = arith.constant 0 : i32
    %c0_i32_0 = arith.constant 0 : i32
    return %1, %c0_i32 : i32, i32
  }
  func.func @transform_1(%arg0: i32, %arg1: i32) -> (i32, i32) {
    %c0_i32 = arith.constant 0 : i32
    %c0_i32_0 = arith.constant 0 : i32
    %c0_i32_1 = arith.constant 0 : i32
    return %c0_i32, %c0_i32_0 : i32, i32
  }
  func.func @transform_2(%arg0: i32, %arg1: i32) -> (i32, i32) {
    %c0_i32 = arith.constant 0 : i32
    %c0_i32_0 = arith.constant 0 : i32
    %c0_i32_1 = arith.constant 0 : i32
    return %c0_i32, %c0_i32_0 : i32, i32
  }
  func.func @transform_3(%arg0: i32, %arg1: i32) -> (i32, i32, i32) {
    %c0_i32 = arith.constant 0 : i32
    %c0_i32_0 = arith.constant 0 : i32
    %c0_i32_1 = arith.constant 0 : i32
    return %arg0, %c0_i32, %c0_i32_0 : i32, i32, i32
  }
}

module attributes {stable_mosaic.version = 11 : i64} {
  func.func @_logmel_l1_kernel(%arg0: i32, %arg1: i32, %arg2: memref<80x256xbf16, #tpu.memory_space<vmem>>, %arg3: memref<256x256xbf16, #tpu.memory_space<vmem>>, %arg4: memref<128x128xbf16, #tpu.memory_space<vmem>>, %arg5: memref<1x8x128xf32, #tpu.memory_space<vmem>>, %arg6: memref<8x128xf32, #tpu.memory_space<vmem>>) attributes {dimension_semantics = [#tpu.dimension_semantics<parallel>, #tpu.dimension_semantics<arbitrary>], iteration_bounds = array<i64: 1, 1>, scalar_prefetch = 0 : i64, scratch_operands = 1 : i64, tpu.core_type = #tpu.core_type<tc>, window_params = [{transform_indices = @transform_0, window_bounds = array<i64: 80, 256>}, {pipeline_mode = #tpu.pipeline_mode<synchronous>, transform_indices = @transform_1, window_bounds = array<i64: 256, 256>}, {pipeline_mode = #tpu.pipeline_mode<synchronous>, transform_indices = @transform_2, window_bounds = array<i64: 128, 128>}, {transform_indices = @transform_3, window_bounds = array<i64: 1, 8, 128>}]} {
    %c0_i32 = arith.constant 0 : i32
    %0 = arith.cmpi eq, %arg1, %c0_i32 : i32
    %1 = arith.extui %0 : i1 to i32
    %c0_i32_0 = arith.constant 0 : i32
    %2 = arith.cmpi ne, %1, %c0_i32_0 : i32
    scf.if %2 {
      %cst_18 = arith.constant 0.000000e+00 : f32
      %35 = vector.broadcast %cst_18 : f32 to vector<8x128xf32>
      %c0_19 = arith.constant 0 : index
      %c0_20 = arith.constant 0 : index
      %36 = vector.load %arg6[%c0_19, %c0_20] : memref<8x128xf32, #tpu.memory_space<vmem>>, vector<8x128xf32>
      tpu.vector_store %arg6[%c0_19, %c0_20], %35 {strides = array<i32>} : memref<8x128xf32, #tpu.memory_space<vmem>>, vector<8x128xf32>,
    } else {
    }
    %c0 = arith.constant 0 : index
    %c0_1 = arith.constant 0 : index
    %3 = vector.load %arg2[%c0, %c0_1] : memref<80x256xbf16, #tpu.memory_space<vmem>>, vector<80x256xbf16>
    %c0_2 = arith.constant 0 : index
    %c0_3 = arith.constant 0 : index
    %4 = vector.load %arg3[%c0_2, %c0_3] : memref<256x256xbf16, #tpu.memory_space<vmem>>, vector<256x256xbf16>
    %cst = arith.constant dense<0.000000e+00> : vector<80x256xf32>
    %5 = tpu.matmul %3, %4, %cst {dimension_numbers = #tpu.dot_dimension_numbers<[1], [0], [0], [1], [0, 0, 1, 1], [], []>} : vector<80x256xbf16>, vector<256x256xbf16>, vector<80x256xf32> -> vector<80x256xf32>
    %6 = vector.extract_strided_slice %5 {offsets = [0, 0], sizes = [80, 128], strides = [1, 1]} : vector<80x256xf32> to vector<80x128xf32>
    %7 = arith.mulf %6, %6 : vector<80x128xf32>
    %8 = vector.extract_strided_slice %5 {offsets = [0, 128], sizes = [80, 128], strides = [1, 1]} : vector<80x256xf32> to vector<80x128xf32>
    %9 = arith.mulf %8, %8 : vector<80x128xf32>
    %10 = arith.addf %7, %9 : vector<80x128xf32>
    %11 = arith.truncf %10 : vector<80x128xf32> to vector<80x128xbf16>
    %12 = arith.extf %11 : vector<80x128xbf16> to vector<80x128xf32>
    %13 = arith.subf %10, %12 : vector<80x128xf32>
    %14 = arith.truncf %13 : vector<80x128xf32> to vector<80x128xbf16>
    %c0_4 = arith.constant 0 : index
    %c0_5 = arith.constant 0 : index
    %15 = vector.load %arg4[%c0_4, %c0_5] : memref<128x128xbf16, #tpu.memory_space<vmem>>, vector<128x128xbf16>
    %cst_6 = arith.constant dense<0.000000e+00> : vector<80x128xf32>
    %16 = tpu.matmul %11, %15, %cst_6 {dimension_numbers = #tpu.dot_dimension_numbers<[1], [0], [0], [1], [0, 0, 1, 1], [], []>} : vector<80x128xbf16>, vector<128x128xbf16>, vector<80x128xf32> -> vector<80x128xf32>
    %c0_7 = arith.constant 0 : index
    %c0_8 = arith.constant 0 : index
    %17 = vector.load %arg4[%c0_7, %c0_8] : memref<128x128xbf16, #tpu.memory_space<vmem>>, vector<128x128xbf16>
    %cst_9 = arith.constant dense<0.000000e+00> : vector<80x128xf32>
    %18 = tpu.matmul %14, %17, %cst_9 {dimension_numbers = #tpu.dot_dimension_numbers<[1], [0], [0], [1], [0, 0, 1, 1], [], []>} : vector<80x128xbf16>, vector<128x128xbf16>, vector<80x128xf32> -> vector<80x128xf32>
    %19 = arith.addf %16, %18 : vector<80x128xf32>
    %cst_10 = arith.constant 1.000000e-07 : f32
    %20 = vector.broadcast %cst_10 : f32 to vector<80x128xf32>
    %21 = arith.maximumf %19, %20 : vector<80x128xf32>
    %22 = math.log %21 : vector<80x128xf32>
    %23 = vector.extract_strided_slice %22 {offsets = [0, 0], sizes = [40, 128], strides = [1, 1]} : vector<80x128xf32> to vector<40x128xf32>
    %24 = vector.extract_strided_slice %22 {offsets = [40, 0], sizes = [40, 128], strides = [1, 1]} : vector<80x128xf32> to vector<40x128xf32>
    %25 = arith.subf %23, %24 : vector<40x128xf32>
    %26 = math.absf %25 : vector<40x128xf32>
    %c0_11 = arith.constant 0 : index
    %c0_12 = arith.constant 0 : index
    %27 = vector.load %arg6[%c0_11, %c0_12] : memref<8x128xf32, #tpu.memory_space<vmem>>, vector<8x128xf32>
    %28 = vector.shape_cast %26 : vector<40x128xf32> to vector<5x8x128xf32>
    %cst_13 = arith.constant dense<0.000000e+00> : vector<8x128xf32>
    %29 = vector.multi_reduction <add>, %28, %cst_13 [0] : vector<5x8x128xf32> to vector<8x128xf32>
    %30 = arith.addf %27, %29 : vector<8x128xf32>
    %c0_14 = arith.constant 0 : index
    %c0_15 = arith.constant 0 : index
    %31 = vector.load %arg6[%c0_14, %c0_15] : memref<8x128xf32, #tpu.memory_space<vmem>>, vector<8x128xf32>
    tpu.vector_store %arg6[%c0_14, %c0_15], %30 {strides = array<i32>} : memref<8x128xf32, #tpu.memory_space<vmem>>, vector<8x128xf32>,
    %c0_i32_16 = arith.constant 0 : i32
    %32 = arith.cmpi eq, %arg1, %c0_i32_16 : i32
    %33 = arith.extui %32 : i1 to i32
    %c0_i32_17 = arith.constant 0 : i32
    %34 = arith.cmpi ne, %33, %c0_i32_17 : i32
    scf.if %34 {
      %c0_18 = arith.constant 0 : index
      %c0_19 = arith.constant 0 : index
      %35 = vector.load %arg6[%c0_18, %c0_19] : memref<8x128xf32, #tpu.memory_space<vmem>>, vector<8x128xf32>
      %c0_20 = arith.constant 0 : index
      %c0_21 = arith.constant 0 : index
      %c0_22 = arith.constant 0 : index
      %36 = vector.load %arg5[%c0_20, %c0_21, %c0_22] : memref<1x8x128xf32, #tpu.memory_space<vmem>>, vector<1x8x128xf32>
      %37 = vector.shape_cast %36 : vector<1x8x128xf32> to vector<8x128xf32>
      %38 = vector.shape_cast %35 : vector<8x128xf32> to vector<1x8x128xf32>
      tpu.vector_store %arg5[%c0_20, %c0_21, %c0_22], %38 {strides = array<i32>} : memref<1x8x128xf32, #tpu.memory_space<vmem>>, vector<1x8x128xf32>,
    } else {
    }
    return
  }
  func.func @transform_0(%arg0: i32, %arg1: i32) -> (i32, i32) {
    %c1_i32 = arith.constant 1 : i32
    %0 = arith.muli %arg0, %c1_i32 : i32
    %1 = arith.addi %0, %arg1 : i32
    %c0_i32 = arith.constant 0 : i32
    %c0_i32_0 = arith.constant 0 : i32
    return %1, %c0_i32 : i32, i32
  }
  func.func @transform_1(%arg0: i32, %arg1: i32) -> (i32, i32) {
    %c0_i32 = arith.constant 0 : i32
    %c0_i32_0 = arith.constant 0 : i32
    %c0_i32_1 = arith.constant 0 : i32
    return %c0_i32, %c0_i32_0 : i32, i32
  }
  func.func @transform_2(%arg0: i32, %arg1: i32) -> (i32, i32) {
    %c0_i32 = arith.constant 0 : i32
    %c0_i32_0 = arith.constant 0 : i32
    %c0_i32_1 = arith.constant 0 : i32
    return %c0_i32, %c0_i32_0 : i32, i32
  }
  func.func @transform_3(%arg0: i32, %arg1: i32) -> (i32, i32, i32) {
    %c0_i32 = arith.constant 0 : i32
    %c0_i32_0 = arith.constant 0 : i32
    %c0_i32_1 = arith.constant 0 : i32
    return %arg0, %c0_i32, %c0_i32_0 : i32, i32, i32
  }
}

</mosaic_0001>

<bundles_post_ra>
// kernel: tpu_custom_call.1
= control target key start
LH: loop header
LB: loop body
LE: loop exit
PB: predicated region body
PF: predicated region fallthrough
CT: control target
= control target key end

     0   :  { %8 = vsyncpa [#allocation4], 0  ;;  %s1268_s0 = inlined_call_operand.hbm [shape: bf16[80,256], index: 0, kind: input, shape index: {}]   ;;  %s1269_s1 = inlined_call_operand.hbm [shape: bf16[256,256], index: 1, kind: input, shape index: {}]   ;;  %s1270_s2 = inlined_call_operand.hbm [shape: bf16[128,128], index: 2, kind: input, shape index: {}]   ;;  %s1271_s3 = inlined_call_operand.hbm [shape: f32[1,8,128], index: 3, kind: output, shape index: {}]  }
   0x1   :  { %9 = vsyncpa [#allocation7], 0 }
   0x2   :  { %10 = vsyncpa [#allocation5], 0  ;;  %s1105_s12 = smov [#allocation6]   ;;  %s1106_s14 = smov [#allocation3]  }
   0x3   :  { %s33_s13 = sshll.u32 %s1105_s12, 4  ;;  %s21_s15 = sshll.u32 %s1106_s14, 4  ;;  %s34_s13 = int_to_ptr.vmem [resolvable:$true] %s33_s13  ;;  %s1135_s15 = int_to_ptr.vmem [resolvable:$true] %s21_s15 }
   0x4   :  { %s1011_s18 = scalar_lea.hbm %s1269_s1, 4096 }
   0x5   :  { %p1012_p0 = scmp.ne.s32.totalorder %s1269_s1, %s1011_s18  ;;  %p1015_p1 = scmp.lt.u32.totalorder %s1011_s18, %s1269_s1 }
   0x7   :  { %p1017_p2 = pnand %p1015_p1, %p1012_p0 }
   0x9   :  { %1020 = shalt.err (!%p1017_p2)
}
   0xa   :  { %s1021_s23 = scalar_lea.vmem %s34_s13, 4096  ;;  %p1026_p4 = scmp.lt.s32.totalorder %s34_s13, %s34_s13 }
   0xb   :  { %p1022_p3 = scmp.ne.s32.totalorder %s34_s13, %s1021_s23  ;;  %p1027_p5 = scmp.lt.s32.totalorder %s1021_s23, %s1021_s23 }
   0xd   :  { %p1028_p6 = por %p1027_p5, %p1026_p4 }
   0xf   :  { %p1029_p7 = pnand %p1028_p6, %p1022_p3 }
  0x11   :  { %1032 = shalt.err (!%p1029_p7)
}
  0x12   :  { %s1107_s24 = smov 128   ;;  %s1108_s25 = smov 8  }
  0x13   :  { %39 = dma.hbm_to_vmem [thread:$0]  %s1269_s1, 4096, %s34_s13, [#allocation7], %s1107_s24, %s1107_s24, %s1108_s25  }
  0x14   :  { %s1033_s30 = scalar_lea.hbm %s1268_s0, 1280 }
  0x15   :  { %p1034_p8 = scmp.ne.s32.totalorder %s1268_s0, %s1033_s30  ;;  %p1037_p9 = scmp.lt.u32.totalorder %s1033_s30, %s1268_s0 }
  0x17   :  { %p1039_p10 = pnand %p1037_p9, %p1034_p8 }
  0x19   :  { %1042 = shalt.err (!%p1039_p10)
}
  0x1a   :  { %s1043_s8 = scalar_lea.vmem %s1135_s15, 1280  ;;  %p1048_p12 = scmp.lt.s32.totalorder %s1135_s15, %s1135_s15 }
  0x1b   :  { %p1044_p11 = scmp.ne.s32.totalorder %s1135_s15, %s1043_s8  ;;  %p1049_p13 = scmp.lt.s32.totalorder %s1043_s8, %s1043_s8 }
  0x1d   :  { %p1050_p0 = por %p1049_p13, %p1048_p12 }
  0x1f   :  { %p1051_p1 = pnand %p1050_p0, %p1044_p11 }
  0x21   :  { %1054 = shalt.err (!%p1051_p1)
}
  0x22   :  { %27 = dma.hbm_to_vmem [thread:$0]  %s1268_s0, 1280, %s1135_s15, [#allocation4], %s1107_s24, %s1107_s24, %s1108_s25  }
  0x23   :  { %s1109_s10 = smov [#allocation8]   ;;  %s1055_s14 = scalar_lea.hbm %s1270_s2, 1024 }
  0x24   :  { %s45_s11 = sshll.u32 %s1109_s10, 4  ;;  %p1056_p2 = scmp.ne.s32.totalorder %s1270_s2, %s1055_s14  ;;  %s46_s11 = int_to_ptr.vmem [resolvable:$true] %s45_s11 }
  0x25   :  { %p1059_p3 = scmp.lt.u32.totalorder %s1055_s14, %s1270_s2 }
  0x27   :  { %p1061_p4 = pnand %p1059_p3, %p1056_p2 }
  0x29   :  { %1064 = shalt.err (!%p1061_p4)
}
  0x2a   :  { %s1065_s20 = scalar_lea.vmem %s46_s11, 1024  ;;  %p1070_p6 = scmp.lt.s32.totalorder %s46_s11, %s46_s11 }
  0x2b   :  { %p1066_p5 = scmp.ne.s32.totalorder %s46_s11, %s1065_s20  ;;  %p1071_p7 = scmp.lt.s32.totalorder %s1065_s20, %s1065_s20 }
  0x2d   :  { %p1072_p8 = por %p1071_p7, %p1070_p6 }
  0x2f   :  { %p1073_p9 = pnand %p1072_p8, %p1066_p5 }
  0x31   :  { %1076 = shalt.err (!%p1073_p9)
}
  0x32   :  { %s1110_s0 = smov 64   ;;  %s1111_s15 = smov 4  }
  0x33   :  { %51 = dma.hbm_to_vmem [thread:$0]  %s1270_s2, 1024, %s46_s11, [#allocation7], %s1110_s0, %s1110_s0, %s1111_s15  }
  0x34   :  { %1099 = dma.done.wait [#allocation4], 1280  }
  0x35   :  { %1100 = vsyncadd [#allocation4], 4294966016 }
  0x36   :  { %1101 = dma.done.wait [#allocation7], 5120  }
  0x37   :  { %1102 = vsyncadd [#allocation7], 4294962176  ;;  %v1112_v0 = vmov 0.0   ;;  %v920_v1 = vld [vmem:[#allocation6 + $0x4] ss:$8 sps:$4 sm:$0xff]   ;;  %v1186_v23 = vld [vmem:[#allocation8 + $0x10] sm:$0xff]  }
  0x38   :  { %818 = vmatprep.subr.bf16.mxu1 %v1112_v0  ;;  %v922_v2 = vld [vmem:[#allocation6] ss:$8 sps:$4 sm:$0xff]   ;;  %321 = vmatprep.subr.bf16.mxu0 %v920_v1  ;;  %v923_v3 = vld [vmem:[#allocation6 + $0x14] ss:$8 sps:$4 sm:$0xff]   ;;  %v925_v4 = vld [vmem:[#allocation6 + $0x10] ss:$8 sps:$4 sm:$0xff]  }
  0x39   :  { %322 = vmatpush1.bf16.msra.mxu0 %v922_v2  ;;  %v926_v5 = vld [vmem:[#allocation6 + $0x24] ss:$8 sps:$4 sm:$0xff]   ;;  %v928_v6 = vld [vmem:[#allocation6 + $0x20] ss:$8 sps:$4 sm:$0xff]   ;;  %v929_v7 = vld [vmem:[#allocation6 + $0x34] ss:$8 sps:$4 sm:$0xff]  }
  0x3a   :  { %323 = vmatprep.subr.bf16.mxu0 %v923_v3  ;;  %v931_v8 = vld [vmem:[#allocation6 + $0x30] ss:$8 sps:$4 sm:$0xff]   ;;  %v932_v9 = vld [vmem:[#allocation6 + $0x44] ss:$8 sps:$4 sm:$0xff]   ;;  %v934_v10 = vld [vmem:[#allocation6 + $0x40] ss:$8 sps:$4 sm:$0xff]  }
  0x3b   :  { %v935_v11 = vld [vmem:[#allocation6 + $0x54] ss:$8 sps:$4 sm:$0xff]   ;;  %v937_v12 = vld [vmem:[#allocation6 + $0x50] ss:$8 sps:$4 sm:$0xff]   ;;  %v938_v13 = vld [vmem:[#allocation6 + $0x64] ss:$8 sps:$4 sm:$0xff]  }
  0x3c   :  { %v970_v14 = vld [vmem:[#allocation3 + $0x4] ss:$8 sps:$4 sm:$0xff]   ;;  %v940_v15 = vld [vmem:[#allocation6 + $0x60] ss:$8 sps:$4 sm:$0xff]   ;;  %v943_v17 = vld [vmem:[#allocation6 + $0x70] ss:$8 sps:$4 sm:$0xff]  }
  0x3d   :  { %324 = vmatpush1.bf16.msra.mxu0 %v925_v4  ;;  %v941_v16 = vld [vmem:[#allocation6 + $0x74] ss:$8 sps:$4 sm:$0xff]   ;;  %353 = vmatprep.mubr.bf16.mxu0 %v970_v14  ;;  %v944_v18 = vld [vmem:[#allocation6 + $0x84] ss:$8 sps:$4 sm:$0xff]   ;;  %v946_v20 = vld [vmem:[#allocation6 + $0x80] ss:$8 sps:$4 sm:$0xff]  }
  0x3e   :  { %325 = vmatprep.subr.bf16.mxu0 %v926_v5  ;;  %v1179_v19 = vld [vmem:[#allocation8] sm:$0xff]   ;;  %v1182_v21 = vld [vmem:[#allocation8 + $0x8] sm:$0xff]   ;;  %v947_v22 = vld [vmem:[#allocation6 + $0x94] ss:$8 sps:$4 sm:$0xff]   ;;  %vm1113_vm0 = vmmov 0   ;;  %s1114_s2 = smov [#allocation9]  }
  0x3f   :  { %819 = vmatpush3.bf16.msra.mxu1 %v1179_v19  ;;  %v949_v24 = vld [vmem:[#allocation6 + $0x90] ss:$8 sps:$4 sm:$0xff]   ;;  %v950_v25 = vld [vmem:[#allocation6 + $0xa4] ss:$8 sps:$4 sm:$0xff]   ;;  %v952_v27 = vld [vmem:[#allocation6 + $0xa0] ss:$8 sps:$4 sm:$0xff]   ;;  %834 = vmatprep.mubr.msk.bf16.mxu1 %vm1113_vm0, %v1112_v0 }
  0x40   :  { %820 = vmatprep.subr.bf16.mxu1 %v1112_v0  ;;  %v1190_v26 = vld [vmem:[#allocation8 + $0x18] sm:$0xff]   ;;  %v956_v30 = vld [vmem:[#allocation6 + $0xc4] ss:$8 sps:$4 sm:$0xff]   ;;  %v958_v31 = vld [vmem:[#allocation6 + $0xc0] ss:$8 sps:$4 sm:$0xff]   ;;  %s732_s23 = sshll.u32 %s1114_s2, 4  ;;  %s733_s23 = int_to_ptr.vmem [resolvable:$true] %s732_s23 }
  0x41   :  { %326 = vmatpush1.bf16.msra.mxu0 %v928_v6  ;;  %v953_v28 = vld [vmem:[#allocation6 + $0xb4] ss:$8 sps:$4 sm:$0xff]   ;;  %v955_v29 = vld [vmem:[#allocation6 + $0xb0] ss:$8 sps:$4 sm:$0xff]   ;;  %v962_v34 = vld [vmem:[#allocation6 + $0xe4] ss:$8 sps:$4 sm:$0xff]   ;;  %p1082_p11 = scmp.lt.s32.totalorder %s733_s23, %s733_s23 }
  0x42   :  { %327 = vmatprep.subr.bf16.mxu0 %v929_v7  ;;  %v959_v32 = vld [vmem:[#allocation6 + $0xd4] ss:$8 sps:$4 sm:$0xff]   ;;  %v961_v33 = vld [vmem:[#allocation6 + $0xd0] ss:$8 sps:$4 sm:$0xff]   ;;  %v964_v35 = vld [vmem:[#allocation6 + $0xe0] ss:$8 sps:$4 sm:$0xff]  }
  0x43   :  { %821 = vmatpush3.bf16.msra.mxu1 %v1182_v21  ;;  %v965_v36 = vld [vmem:[#allocation6 + $0xf4] ss:$8 sps:$4 sm:$0xff]   ;;  %v967_v37 = vld [vmem:[#allocation6 + $0xf0] ss:$8 sps:$4 sm:$0xff]   ;;  %v971_v39 = vld [vmem:[#allocation3 + $0x14] ss:$8 sps:$4 sm:$0xff]  }
  0x44   :  { %822 = vmatprep.subr.bf16.mxu1 %v1112_v0  ;;  %v968_v38 = vld [vmem:[#allocation3] ss:$8 sps:$4 sm:$0xff]   ;;  %v973_v40 = vld [vmem:[#allocation3 + $0x10] ss:$8 sps:$4 sm:$0xff]   ;;  %v974_v41 = vld [vmem:[#allocation3 + $0x24] ss:$8 sps:$4 sm:$0xff]  }
  0x45   :  { %328 = vmatpush1.bf16.msra.mxu0 %v931_v8  ;;  %v976_v42 = vld [vmem:[#allocation3 + $0x20] ss:$8 sps:$4 sm:$0xff]   ;;  %v977_v43 = vld [vmem:[#allocation3 + $0x34] ss:$8 sps:$4 sm:$0xff]   ;;  %v979_v44 = vld [vmem:[#allocation3 + $0x30] ss:$8 sps:$4 sm:$0xff]  }
  0x46   :  { %329 = vmatprep.subr.bf16.mxu0 %v932_v9  ;;  %v980_v45 = vld [vmem:[#allocation3 + $0x44] ss:$8 sps:$4 sm:$0xff]   ;;  %v982_v46 = vld [vmem:[#allocation3 + $0x40] ss:$8 sps:$4 sm:$0xff]   ;;  %v1195_v47 = vld [vmem:[#allocation8 + $0x20] sm:$0xff]   ;;  %s1077_s24 = scalar_lea.vmem %s733_s23, 128 }
  0x47   :  { %823 = vmatpush3.bf16.msra.mxu1 %v1186_v23  ;;  %v1199_v48 = vld [vmem:[#allocation8 + $0x28] sm:$0xff]   ;;  %v1203_v49 = vld [vmem:[#allocation8 + $0x30] sm:$0xff]   ;;  %v1207_v50 = vld [vmem:[#allocation8 + $0x38] sm:$0xff]   ;;  %p1078_p10 = scmp.ne.s32.totalorder %s733_s23, %s1077_s24  ;;  %p1083_p12 = scmp.lt.s32.totalorder %s1077_s24, %s1077_s24 }
  0x48   :  { %824 = vmatprep.subr.bf16.mxu1 %v1112_v0 }
  0x49   :  { %330 = vmatpush1.bf16.msra.mxu0 %v934_v10  ;;  %p1084_p13 = por %p1083_p12, %p1082_p11 }
  0x4a   :  { %331 = vmatprep.subr.bf16.mxu0 %v935_v11 }
  0x4b   :  { %825 = vmatpush3.bf16.msra.mxu1 %v1190_v26  ;;  %p1085_p0 = pnand %p1084_p13, %p1078_p10 }
  0x4c   :  { %826 = vmatprep.subr.bf16.mxu1 %v1112_v0 }
  0x4d   :  { %332 = vmatpush1.bf16.msra.mxu0 %v937_v12 }
  0x4e   :  { %333 = vmatprep.subr.bf16.mxu0 %v938_v13 }
  0x4f   :  { %827 = vmatpush3.bf16.msra.mxu1 %v1195_v47 }
  0x50   :  { %828 = vmatprep.subr.bf16.mxu1 %v1112_v0 }
  0x51   :  { %334 = vmatpush1.bf16.msra.mxu0 %v940_v15 }
  0x52   :  { %335 = vmatprep.subr.bf16.mxu0 %v941_v16 }
  0x53   :  { %829 = vmatpush3.bf16.msra.mxu1 %v1199_v48 }
  0x54   :  { %830 = vmatprep.subr.bf16.mxu1 %v1112_v0 }
  0x55   :  { %336 = vmatpush1.bf16.msra.mxu0 %v943_v17 }
  0x56   :  { %337 = vmatprep.subr.bf16.mxu0 %v944_v18 }
  0x57   :  { %831 = vmatpush3.bf16.msra.mxu1 %v1203_v49 }
  0x58   :  { %832 = vmatprep.subr.bf16.mxu1 %v1112_v0 }
  0x59   :  { %338 = vmatpush1.bf16.msra.mxu0 %v946_v20 }
  0x5a   :  { %339 = vmatprep.subr.bf16.mxu0 %v947_v22 }
  0x5b   :  { %833 = vmatpush3.bf16.msra.mxu1 %v1207_v50 }
  0x5c   :  { %854 = vmatprep.subr.bf16.mxu1 %v1112_v0 }
  0x5d   :  { %340 = vmatpush1.bf16.msra.mxu0 %v949_v24 }
  0x5e   :  { %341 = vmatprep.subr.bf16.mxu0 %v950_v25 }
  0x61   :  { %342 = vmatpush1.bf16.msra.mxu0 %v952_v27 }
  0x62   :  { %343 = vmatprep.subr.bf16.mxu0 %v953_v28 }
  0x65   :  { %344 = vmatpush1.bf16.msra.mxu0 %v955_v29 }
  0x66   :  { %345 = vmatprep.subr.bf16.mxu0 %v956_v30 }
  0x69   :  { %346 = vmatpush1.bf16.msra.mxu0 %v958_v31 }
  0x6a   :  { %347 = vmatprep.subr.bf16.mxu0 %v959_v32 }
  0x6d   :  { %348 = vmatpush1.bf16.msra.mxu0 %v961_v33 }
  0x6e   :  { %349 = vmatprep.subr.bf16.mxu0 %v962_v34 }
  0x71   :  { %350 = vmatpush1.bf16.msra.mxu0 %v964_v35 }
  0x72   :  { %351 = vmatprep.subr.bf16.mxu0 %v965_v36 }
  0x75   :  { %352 = vmatpush1.bf16.msra.mxu0 %v967_v37 }
  0x78   :  { %354 = vmatmul.mubr.bf16.vlgmr.msra.gmra.mrb[0].mxu0 %v968_v38 }
  0x79   :  { %363 = vmatprep.mubr.bf16.mxu0 %v971_v39 }
  0x80   :  { %364 = vmatmul.mubr.bf16.gmra.mrb[4].mxu0 %v973_v40 }
  0x81   :  { %373 = vmatprep.mubr.bf16.mxu0 %v974_v41 }
  0x88   :  { %374 = vmatmul.mubr.bf16.gmra.mrb[8].mxu0 %v976_v42 }
  0x89   :  { %383 = vmatprep.mubr.bf16.mxu0 %v977_v43 }
  0x90   :  { %384 = vmatmul.mubr.bf16.gmra.mrb[12].mxu0 %v979_v44 }
  0x91   :  { %393 = vmatprep.mubr.bf16.mxu0 %v980_v45 }
  0x98   :  { %394 = vmatmul.mubr.bf16.gmra.mrb[16].mxu0 %v982_v46 }
 0x14b   :  { %v355_v51 = vpop.f32.mrb[0].mxu0 }
 0x14c   :  { %v404_v52 = vmul.f32 %v355_v51, %v355_v51  ;;  %v357_v53 = vpop.f32.mrb[1].mxu0 }
 0x14d   :  { %v414_v54 = vmul.f32 %v357_v53, %v357_v53  ;;  %v359_v55 = vpop.f32.mrb[2].mxu0 }
 0x14e   :  { %v405_v56 = vmul.f32 %v359_v55, %v359_v55  ;;  %v361_v57 = vpop.f32.mrb[3].mxu0 }
 0x14f   :  { %v424_v58 = vadd.f32 %v414_v54, %v404_v52  ;;  %v415_v59 = vmul.f32 %v361_v57, %v361_v57 }
 0x151   :  { %v425_v60 = vadd.f32 %v415_v59, %v405_v56 }
 0x153   :  { %v1213_v61 = vpack.c.bf16 %v425_v60, %v424_v58  ;;  %v365_v62 = vpop.f32.mrb[4].mxu0 }
 0x154   :  { %v406_v63 = vmul.f32 %v365_v62, %v365_v62  ;;  %v367_v1 = vpop.f32.mrb[5].mxu0 }
 0x155   :  { %v440_v2 = vunpack.c.h.bf16 %v1213_v61  ;;  %v416_v3 = vmul.f32 %v367_v1, %v367_v1  ;;  %v369_v4 = vpop.f32.mrb[6].mxu0  ;;  %v439_v5 = vunpack.c.l.bf16 %v1213_v61 }
 0x156   :  { %v407_v6 = vmul.f32 %v369_v4, %v369_v4  ;;  %v371_v7 = vpop.f32.mrb[7].mxu0 }
 0x157   :  { %v450_v8 = vsub.f32 %v425_v60, %v440_v2  ;;  %v426_v9 = vadd.f32 %v416_v3, %v406_v63  ;;  %v417_v10 = vmul.f32 %v371_v7, %v371_v7  ;;  %v449_v11 = vsub.f32 %v424_v58, %v439_v5 }
 0x159   :  { %v427_v12 = vadd.f32 %v417_v10, %v407_v6  ;;  %v459_v13 = vpack.c.bf16 %v450_v8, %v449_v11 }
 0x15b   :  { %v1217_v14 = vpack.c.bf16 %v427_v12, %v426_v9  ;;  %v375_v15 = vpop.f32.mrb[8].mxu0  ;;  %835 = vmatmul.mubr.bf16.vlgmr.msra.gmra.mrb[0].mxu1 %v459_v13 }
 0x15c   :  { %v408_v16 = vmul.f32 %v375_v15, %v375_v15  ;;  %855 = vmatpush3.bf16.msra.mxu1 %v1179_v19  ;;  %v377_v17 = vpop.f32.mrb[9].mxu0  ;;  %838 = vmatprep.mubr.msk.bf16.mxu1 %vm1113_vm0, %v1112_v0 }
 0x15d   :  { %v442_v18 = vunpack.c.h.bf16 %v1217_v14  ;;  %v418_v20 = vmul.f32 %v377_v17, %v377_v17  ;;  %v379_v22 = vpop.f32.mrb[10].mxu0  ;;  %856 = vmatprep.subr.bf16.mxu1 %v1112_v0  ;;  %v441_v24 = vunpack.c.l.bf16 %v1217_v14 }
 0x15e   :  { %v409_v25 = vmul.f32 %v379_v22, %v379_v22  ;;  %v381_v27 = vpop.f32.mrb[11].mxu0 }
 0x15f   :  { %v452_v28 = vsub.f32 %v427_v12, %v442_v18  ;;  %v428_v29 = vadd.f32 %v418_v20, %v408_v16  ;;  %v419_v30 = vmul.f32 %v381_v27, %v381_v27  ;;  %v451_v31 = vsub.f32 %v426_v9, %v441_v24 }
 0x160   :  { %857 = vmatpush3.bf16.msra.mxu1 %v1182_v21 }
 0x161   :  { %v429_v19 = vadd.f32 %v419_v30, %v409_v25  ;;  %v460_v32 = vpack.c.bf16 %v452_v28, %v451_v31  ;;  %858 = vmatprep.subr.bf16.mxu1 %v1112_v0 }
 0x163   :  { %v436_v33 = vpack.c.bf16 %v429_v19, %v428_v29  ;;  %v385_v34 = vpop.f32.mrb[12].mxu0  ;;  %839 = vmatmul.mubr.bf16.gmra.mrb[4].mxu1 %v460_v32 }
 0x164   :  { %v410_v35 = vmul.f32 %v385_v34, %v385_v34  ;;  %v387_v36 = vpop.f32.mrb[13].mxu0  ;;  %859 = vmatpush3.bf16.msra.mxu1 %v1186_v23  ;;  %842 = vmatprep.mubr.msk.bf16.mxu1 %vm1113_vm0, %v1112_v0 }
 0x165   :  { %v444_v37 = vunpack.c.h.bf16 %v436_v33  ;;  %v420_v38 = vmul.f32 %v387_v36, %v387_v36  ;;  %v389_v39 = vpop.f32.mrb[14].mxu0  ;;  %860 = vmatprep.subr.bf16.mxu1 %v1112_v0  ;;  %v443_v21 = vunpack.c.l.bf16 %v436_v33 }
 0x166   :  { %v411_v40 = vmul.f32 %v389_v39, %v389_v39  ;;  %v391_v41 = vpop.f32.mrb[15].mxu0 }
 0x167   :  { %v454_v42 = vsub.f32 %v429_v19, %v444_v37  ;;  %v430_v43 = vadd.f32 %v420_v38, %v410_v35  ;;  %v421_v44 = vmul.f32 %v391_v41, %v391_v41  ;;  %v453_v45 = vsub.f32 %v428_v29, %v443_v21 }
 0x168   :  { %861 = vmatpush3.bf16.msra.mxu1 %v1190_v26 }
 0x169   :  { %v431_v46 = vadd.f32 %v421_v44, %v411_v40  ;;  %v461_v51 = vpack.c.bf16 %v454_v42, %v453_v45  ;;  %862 = vmatprep.subr.bf16.mxu1 %v1112_v0 }
 0x16b   :  { %v437_v23 = vpack.c.bf16 %v431_v46, %v430_v43  ;;  %v395_v52 = vpop.f32.mrb[16].mxu0  ;;  %843 = vmatmul.mubr.bf16.gmra.mrb[8].mxu1 %v461_v51 }
 0x16c   :  { %v412_v53 = vmul.f32 %v395_v52, %v395_v52  ;;  %v397_v54 = vpop.f32.mrb[17].mxu0  ;;  %863 = vmatpush3.bf16.msra.mxu1 %v1195_v47  ;;  %846 = vmatprep.mubr.msk.bf16.mxu1 %vm1113_vm0, %v1112_v0 }
 0x16d   :  { %v446_v55 = vunpack.c.h.bf16 %v437_v23  ;;  %v422_v56 = vmul.f32 %v397_v54, %v397_v54  ;;  %v399_v57 = vpop.f32.mrb[18].mxu0  ;;  %v445_v58 = vunpack.c.l.bf16 %v437_v23  ;;  %864 = vmatprep.subr.bf16.mxu1 %v1112_v0 }
 0x16e   :  { %v413_v26 = vmul.f32 %v399_v57, %v399_v57  ;;  %v401_v59 = vpop.f32.mrb[19].mxu0 }
 0x16f   :  { %v456_v60 = vsub.f32 %v431_v46, %v446_v55  ;;  %v432_v62 = vadd.f32 %v422_v56, %v412_v53  ;;  %v423_v63 = vmul.f32 %v401_v59, %v401_v59  ;;  %v455_v1 = vsub.f32 %v430_v43, %v445_v58 }
 0x170   :  { %865 = vmatpush3.bf16.msra.mxu1 %v1199_v48 }
 0x171   :  { %v433_v2 = vadd.f32 %v423_v63, %v413_v26  ;;  %v462_v3 = vpack.c.bf16 %v456_v60, %v455_v1  ;;  %866 = vmatprep.subr.bf16.mxu1 %v1112_v0 }
 0x173   :  { %v438_v47 = vpack.c.bf16 %v433_v2, %v432_v62  ;;  %847 = vmatmul.mubr.bf16.gmra.mrb[12].mxu1 %v462_v3 }
 0x174   :  { %867 = vmatpush3.bf16.msra.mxu1 %v1203_v49  ;;  %850 = vmatprep.mubr.msk.bf16.mxu1 %vm1113_vm0, %v1112_v0 }
 0x175   :  { %v448_v4 = vunpack.c.h.bf16 %v438_v47  ;;  %v447_v5 = vunpack.c.l.bf16 %v438_v47  ;;  %868 = vmatprep.subr.bf16.mxu1 %v1112_v0 }
 0x177   :  { %v458_v6 = vsub.f32 %v433_v2, %v448_v4  ;;  %v457_v7 = vsub.f32 %v432_v62, %v447_v5 }
 0x178   :  { %869 = vmatpush3.bf16.msra.mxu1 %v1207_v50 }
 0x179   :  { %v463_v48 = vpack.c.bf16 %v458_v6, %v457_v7 }
 0x17b   :  { %851 = vmatmul.mubr.bf16.gmra.mrb[16].mxu1 %v463_v48 }
 0x17c   :  { %870 = vmatprep.mubr.msk.bf16.mxu1 %vm1113_vm0, %v1112_v0 }
 0x183   :  { %871 = vmatmul.mubr.bf16.vlgmr.msra.gmra.mrb[0].mxu1 %v1213_v61 }
 0x184   :  { %874 = vmatprep.mubr.msk.bf16.mxu1 %vm1113_vm0, %v1112_v0 }
 0x18b   :  { %875 = vmatmul.mubr.bf16.gmra.mrb[4].mxu1 %v1217_v14 }
 0x18c   :  { %878 = vmatprep.mubr.msk.bf16.mxu1 %vm1113_vm0, %v1112_v0 }
 0x193   :  { %879 = vmatmul.mubr.bf16.gmra.mrb[8].mxu1 %v436_v33 }
 0x194   :  { %882 = vmatprep.mubr.msk.bf16.mxu1 %vm1113_vm0, %v1112_v0 }
 0x19b   :  { %883 = vmatmul.mubr.bf16.gmra.mrb[12].mxu1 %v437_v23 }
 0x19c   :  { %886 = vmatprep.mubr.msk.bf16.mxu1 %vm1113_vm0, %v1112_v0 }
 0x1a3   :  { %887 = vmatmul.mubr.bf16.gmra.mrb[16].mxu1 %v438_v47 }
 0x256   :  { %v635_v49 = vpop.f32.mrb[0].mxu1 }
 0x257   :  { %v872_v50 = vpop.f32.mrb[1].mxu1  ;;  %v674_v13 = vmax.f32 %v635_v49, 1e-07 }
 0x258   :  { %v638_v61 = vpop.f32.mrb[2].mxu1 }
 0x259   :  { %v873_v8 = vpop.f32.mrb[3].mxu1  ;;  %991 = vlog2.f32 %v674_v13  ;;  %v675_v20 = vmax.f32 %v638_v61, 1e-07 }
 0x25e   :  { %v643_v9 = vpop.f32.mrb[4].mxu1 }
 0x25f   :  { %v876_v10 = vpop.f32.mrb[5].mxu1  ;;  %v676_v22 = vmax.f32 %v643_v9, 1e-07 }
 0x260   :  { %v646_v11 = vpop.f32.mrb[6].mxu1 }
 0x261   :  { %v877_v12 = vpop.f32.mrb[7].mxu1  ;;  %v677_v31 = vmax.f32 %v646_v11, 1e-07 }
 0x263   :  { %v992_v30 = vpop.eup %991 }
 0x264   :  { %v685_v33 = vmul.f32 0.6931472, %v992_v30 }
 0x266   :  { %v651_v14 = vpop.f32.mrb[8].mxu1 }
 0x267   :  { %v880_v15 = vpop.f32.mrb[9].mxu1  ;;  %v678_v19 = vmax.f32 %v651_v14, 1e-07 }
 0x268   :  { %v654_v16 = vpop.f32.mrb[10].mxu1 }
 0x269   :  { %v679_v17 = vmax.f32 %v654_v16, 1e-07  ;;  %v881_v18 = vpop.f32.mrb[11].mxu1 }
 0x26b   :  { %993 = vlog2.f32 %v679_v17 }
 0x26c   :  { %995 = vlog2.f32 %v675_v20 }
 0x26d   :  { %997 = vlog2.f32 %v676_v22 }
 0x26e   :  { %v659_v0 = vpop.f32.mrb[12].mxu1 }
 0x26f   :  { %v680_v24 = vmax.f32 %v659_v0, 1e-07  ;;  %v884_v25 = vpop.f32.mrb[13].mxu1 }
 0x270   :  { %v662_v27 = vpop.f32.mrb[14].mxu1 }
 0x271   :  { %999 = vlog2.f32 %v680_v24  ;;  %v681_v28 = vmax.f32 %v662_v27, 1e-07  ;;  %v885_v29 = vpop.f32.mrb[15].mxu1 }
 0x273   :  { %1001 = vlog2.f32 %v681_v28 }
 0x274   :  { %1003 = vlog2.f32 %v677_v31 }
 0x275   :  { %v994_v32 = vpop.eup %993  ;;  %1005 = vlog2.f32 %v678_v19 }
 0x276   :  { %v695_v34 = vmul.f32 0.6931472, %v994_v32  ;;  %v667_v35 = vpop.f32.mrb[16].mxu1  ;;  %v996_v21 = vpop.eup %995 }
 0x277   :  { %v682_v36 = vmax.f32 %v667_v35, 1e-07  ;;  %v888_v37 = vpop.f32.mrb[17].mxu1  ;;  %v998_v42 = vpop.eup %997  ;;  %v687_v44 = vmul.f32 0.6931472, %v996_v21 }
 0x278   :  { %v704_v38 = vsub.f32 %v685_v33, %v695_v34  ;;  %v670_v39 = vpop.f32.mrb[18].mxu1  ;;  %v689_v51 = vmul.f32 0.6931472, %v998_v42 }
 0x279   :  { %1007 = vlog2.f32 %v682_v36  ;;  %v683_v40 = vmax.f32 %v670_v39, 1e-07  ;;  %v889_v41 = vpop.f32.mrb[19].mxu1 }
 0x27a   :  { %v709_v53 = vand.u32 2147483647, %v704_v38 }
 0x27b   :  { %v1000_v43 = vpop.eup %999  ;;  %1009 = vlog2.f32 %v683_v40 }
 0x27c   :  { %v697_v45 = vmul.f32 0.6931472, %v1000_v43 }
 0x27d   :  { %v1002_v46 = vpop.eup %1001 }
 0x27e   :  { %v705_v23 = vsub.f32 %v687_v44, %v697_v45  ;;  %v699_v52 = vmul.f32 0.6931472, %v1002_v46  ;;  %v1004_v56 = vpop.eup %1003 }
 0x27f   :  { %v1006_v57 = vpop.eup %1005  ;;  %v691_v60 = vmul.f32 0.6931472, %v1004_v56 }
 0x280   :  { %v710_v54 = vand.u32 2147483647, %v705_v23  ;;  %v706_v55 = vsub.f32 %v689_v51, %v699_v52  ;;  %v693_v2 = vmul.f32 0.6931472, %v1006_v57 }
 0x282   :  { %v715_v58 = vadd.f32 %v710_v54, %v709_v53  ;;  %v711_v26 = vand.u32 2147483647, %v706_v55 }
 0x283   :  { %v1008_v59 = vpop.eup %1007 }
 0x284   :  { %v701_v62 = vmul.f32 0.6931472, %v1008_v59  ;;  %v716_v63 = vadd.f32 %v715_v58, %v711_v26 }
 0x285   :  { %v1010_v1 = vpop.eup %1009 }
 0x286   :  { %v707_v3 = vsub.f32 %v691_v60, %v701_v62  ;;  %v703_v47 = vmul.f32 0.6931472, %v1010_v1 }
 0x288   :  { %v712_v4 = vand.u32 2147483647, %v707_v3  ;;  %v708_v5 = vsub.f32 %v693_v2, %v703_v47 }
 0x28a   :  { %v713_v6 = vand.u32 2147483647, %v708_v5  ;;  %v717_v7 = vadd.f32 %v716_v63, %v712_v4 }
 0x28c   :  { %v718_v48 = vadd.f32 %v717_v7, %v713_v6 }
 0x28e   :  { %725 = vst [vmem:[#allocation9] sm:$0xff] %v718_v48 }
 0x28f   :  { %1088 = shalt.err (!%p1085_p0)
}
 0x290   :  { %s1089_s27 = scalar_lea.hbm %s1271_s3, 128 }
 0x291   :  { %p1090_p1 = scmp.ne.s32.totalorder %s1271_s3, %s1089_s27  ;;  %p1093_p2 = scmp.lt.u32.totalorder %s1089_s27, %s1271_s3 }
 0x293   :  { %p1095_p3 = pnand %p1093_p2, %p1090_p1 }
 0x295   :  { %1098 = shalt.err (!%p1095_p3)
}
 0x296   :  { %735 = dma.vmem_to_hbm [thread:$0]  %s733_s23, 128, %s1271_s3, [#allocation5]  }
 0x297   :  { %1103 = dma.done.wait [#allocation5], 128  }
 0x298   :  { %1104 = vsyncadd [#allocation5], 4294967168 }
 0x299   :  { %739 = vsyncpa [#allocation4], 1 }
 0x29a   :  { %740 = vsyncpa [#allocation7], 1 }
 0x29b   :  { %741 = vsyncpa [#allocation5], 1 }

// kernel: tpu_custom_call.1
= control target key start
LH: loop header
LB: loop body
LE: loop exit
PB: predicated region body
PF: predicated region fallthrough
CT: control target
= control target key end

     0   :  { %8 = vsyncpa [#allocation4], 0  ;;  %s1268_s0 = inlined_call_operand.hbm [shape: bf16[80,256], index: 0, kind: input, shape index: {}]   ;;  %s1269_s1 = inlined_call_operand.hbm [shape: bf16[256,256], index: 1, kind: input, shape index: {}]   ;;  %s1270_s2 = inlined_call_operand.hbm [shape: bf16[128,128], index: 2, kind: input, shape index: {}]   ;;  %s1271_s3 = inlined_call_operand.hbm [shape: f32[1,8,128], index: 3, kind: output, shape index: {}]  }
   0x1   :  { %9 = vsyncpa [#allocation7], 0 }
   0x2   :  { %10 = vsyncpa [#allocation5], 0  ;;  %s1105_s12 = smov [#allocation6]   ;;  %s1106_s14 = smov [#allocation3]  }
   0x3   :  { %s33_s13 = sshll.u32 %s1105_s12, 4  ;;  %s21_s15 = sshll.u32 %s1106_s14, 4  ;;  %s34_s13 = int_to_ptr.vmem [resolvable:$true] %s33_s13  ;;  %s1135_s15 = int_to_ptr.vmem [resolvable:$true] %s21_s15 }
   0x4   :  { %s1011_s18 = scalar_lea.hbm %s1269_s1, 4096 }
   0x5   :  { %p1012_p0 = scmp.ne.s32.totalorder %s1269_s1, %s1011_s18  ;;  %p1015_p1 = scmp.lt.u32.totalorder %s1011_s18, %s1269_s1 }
   0x7   :  { %p1017_p2 = pnand %p1015_p1, %p1012_p0 }
   0x9   :  { %1020 = shalt.err (!%p1017_p2)
}
   0xa   :  { %s1021_s23 = scalar_lea.vmem %s34_s13, 4096  ;;  %p1026_p4 = scmp.lt.s32.totalorder %s34_s13, %s34_s13 }
   0xb   :  { %p1022_p3 = scmp.ne.s32.totalorder %s34_s13, %s1021_s23  ;;  %p1027_p5 = scmp.lt.s32.totalorder %s1021_s23, %s1021_s23 }
   0xd   :  { %p1028_p6 = por %p1027_p5, %p1026_p4 }
   0xf   :  { %p1029_p7 = pnand %p1028_p6, %p1022_p3 }
  0x11   :  { %1032 = shalt.err (!%p1029_p7)
}
  0x12   :  { %s1107_s24 = smov 128   ;;  %s1108_s25 = smov 8  }
  0x13   :  { %39 = dma.hbm_to_vmem [thread:$0]  %s1269_s1, 4096, %s34_s13, [#allocation7], %s1107_s24, %s1107_s24, %s1108_s25  }
  0x14   :  { %s1033_s30 = scalar_lea.hbm %s1268_s0, 1280 }
  0x15   :  { %p1034_p8 = scmp.ne.s32.totalorder %s1268_s0, %s1033_s30  ;;  %p1037_p9 = scmp.lt.u32.totalorder %s1033_s30, %s1268_s0 }
  0x17   :  { %p1039_p10 = pnand %p1037_p9, %p1034_p8 }
  0x19   :  { %1042 = shalt.err (!%p1039_p10)
}
  0x1a   :  { %s1043_s8 = scalar_lea.vmem %s1135_s15, 1280  ;;  %p1048_p12 = scmp.lt.s32.totalorder %s1135_s15, %s1135_s15 }
  0x1b   :  { %p1044_p11 = scmp.ne.s32.totalorder %s1135_s15, %s1043_s8  ;;  %p1049_p13 = scmp.lt.s32.totalorder %s1043_s8, %s1043_s8 }
  0x1d   :  { %p1050_p0 = por %p1049_p13, %p1048_p12 }
  0x1f   :  { %p1051_p1 = pnand %p1050_p0, %p1044_p11 }
  0x21   :  { %1054 = shalt.err (!%p1051_p1)
}
  0x22   :  { %27 = dma.hbm_to_vmem [thread:$0]  %s1268_s0, 1280, %s1135_s15, [#allocation4], %s1107_s24, %s1107_s24, %s1108_s25  }
  0x23   :  { %s1109_s10 = smov [#allocation8]   ;;  %s1055_s14 = scalar_lea.hbm %s1270_s2, 1024 }
  0x24   :  { %s45_s11 = sshll.u32 %s1109_s10, 4  ;;  %p1056_p2 = scmp.ne.s32.totalorder %s1270_s2, %s1055_s14  ;;  %s46_s11 = int_to_ptr.vmem [resolvable:$true] %s45_s11 }
  0x25   :  { %p1059_p3 = scmp.lt.u32.totalorder %s1055_s14, %s1270_s2 }
  0x27   :  { %p1061_p4 = pnand %p1059_p3, %p1056_p2 }
  0x29   :  { %1064 = shalt.err (!%p1061_p4)
}
  0x2a   :  { %s1065_s20 = scalar_lea.vmem %s46_s11, 1024  ;;  %p1070_p6 = scmp.lt.s32.totalorder %s46_s11, %s46_s11 }
  0x2b   :  { %p1066_p5 = scmp.ne.s32.totalorder %s46_s11, %s1065_s20  ;;  %p1071_p7 = scmp.lt.s32.totalorder %s1065_s20, %s1065_s20 }
  0x2d   :  { %p1072_p8 = por %p1071_p7, %p1070_p6 }
  0x2f   :  { %p1073_p9 = pnand %p1072_p8, %p1066_p5 }
  0x31   :  { %1076 = shalt.err (!%p1073_p9)
}
  0x32   :  { %s1110_s0 = smov 64   ;;  %s1111_s15 = smov 4  }
  0x33   :  { %51 = dma.hbm_to_vmem [thread:$0]  %s1270_s2, 1024, %s46_s11, [#allocation7], %s1110_s0, %s1110_s0, %s1111_s15  }
  0x34   :  { %1099 = dma.done.wait [#allocation4], 1280  }
  0x35   :  { %1100 = vsyncadd [#allocation4], 4294966016 }
  0x36   :  { %1101 = dma.done.wait [#allocation7], 5120  }
  0x37   :  { %1102 = vsyncadd [#allocation7], 4294962176  ;;  %v1112_v0 = vmov 0.0   ;;  %v920_v1 = vld [vmem:[#allocation6 + $0x4] ss:$8 sps:$4 sm:$0xff]   ;;  %v1186_v23 = vld [vmem:[#allocation8 + $0x10] sm:$0xff]  }
  0x38   :  { %818 = vmatprep.subr.bf16.mxu1 %v1112_v0  ;;  %v922_v2 = vld [vmem:[#allocation6] ss:$8 sps:$4 sm:$0xff]   ;;  %321 = vmatprep.subr.bf16.mxu0 %v920_v1  ;;  %v923_v3 = vld [vmem:[#allocation6 + $0x14] ss:$8 sps:$4 sm:$0xff]   ;;  %v925_v4 = vld [vmem:[#allocation6 + $0x10] ss:$8 sps:$4 sm:$0xff]  }
  0x39   :  { %322 = vmatpush1.bf16.msra.mxu0 %v922_v2  ;;  %v926_v5 = vld [vmem:[#allocation6 + $0x24] ss:$8 sps:$4 sm:$0xff]   ;;  %v928_v6 = vld [vmem:[#allocation6 + $0x20] ss:$8 sps:$4 sm:$0xff]   ;;  %v929_v7 = vld [vmem:[#allocation6 + $0x34] ss:$8 sps:$4 sm:$0xff]  }
  0x3a   :  { %323 = vmatprep.subr.bf16.mxu0 %v923_v3  ;;  %v931_v8 = vld [vmem:[#allocation6 + $0x30] ss:$8 sps:$4 sm:$0xff]   ;;  %v932_v9 = vld [vmem:[#allocation6 + $0x44] ss:$8 sps:$4 sm:$0xff]   ;;  %v934_v10 = vld [vmem:[#allocation6 + $0x40] ss:$8 sps:$4 sm:$0xff]  }
  0x3b   :  { %v935_v11 = vld [vmem:[#allocation6 + $0x54] ss:$8 sps:$4 sm:$0xff]   ;;  %v937_v12 = vld [vmem:[#allocation6 + $0x50] ss:$8 sps:$4 sm:$0xff]   ;;  %v938_v13 = vld [vmem:[#allocation6 + $0x64] ss:$8 sps:$4 sm:$0xff]  }
  0x3c   :  { %v970_v14 = vld [vmem:[#allocation3 + $0x4] ss:$8 sps:$4 sm:$0xff]   ;;  %v940_v15 = vld [vmem:[#allocation6 + $0x60] ss:$8 sps:$4 sm:$0xff]   ;;  %v943_v17 = vld [vmem:[#allocation6 + $0x70] ss:$8 sps:$4 sm:$0xff]  }
  0x3d   :  { %324 = vmatpush1.bf16.msra.mxu0 %v925_v4  ;;  %v941_v16 = vld [vmem:[#allocation6 + $0x74] ss:$8 sps:$4 sm:$0xff]   ;;  %353 = vmatprep.mubr.bf16.mxu0 %v970_v14  ;;  %v944_v18 = vld [vmem:[#allocation6 + $0x84] ss:$8 sps:$4 sm:$0xff]   ;;  %v946_v20 = vld [vmem:[#allocation6 + $0x80] ss:$8 sps:$4 sm:$0xff]  }
  0x3e   :  { %325 = vmatprep.subr.bf16.mxu0 %v926_v5  ;;  %v1179_v19 = vld [vmem:[#allocation8] sm:$0xff]   ;;  %v1182_v21 = vld [vmem:[#allocation8 + $0x8] sm:$0xff]   ;;  %v947_v22 = vld [vmem:[#allocation6 + $0x94] ss:$8 sps:$4 sm:$0xff]   ;;  %vm1113_vm0 = vmmov 0   ;;  %s1114_s2 = smov [#allocation9]  }
  0x3f   :  { %819 = vmatpush3.bf16.msra.mxu1 %v1179_v19  ;;  %v949_v24 = vld [vmem:[#allocation6 + $0x90] ss:$8 sps:$4 sm:$0xff]   ;;  %v950_v25 = vld [vmem:[#allocation6 + $0xa4] ss:$8 sps:$4 sm:$0xff]   ;;  %v952_v27 = vld [vmem:[#allocation6 + $0xa0] ss:$8 sps:$4 sm:$0xff]   ;;  %834 = vmatprep.mubr.msk.bf16.mxu1 %vm1113_vm0, %v1112_v0 }
  0x40   :  { %820 = vmatprep.subr.bf16.mxu1 %v1112_v0  ;;  %v1190_v26 = vld [vmem:[#allocation8 + $0x18] sm:$0xff]   ;;  %v956_v30 = vld [vmem:[#allocation6 + $0xc4] ss:$8 sps:$4 sm:$0xff]   ;;  %v958_v31 = vld [vmem:[#allocation6 + $0xc0] ss:$8 sps:$4 sm:$0xff]   ;;  %s732_s23 = sshll.u32 %s1114_s2, 4  ;;  %s733_s23 = int_to_ptr.vmem [resolvable:$true] %s732_s23 }
  0x41   :  { %326 = vmatpush1.bf16.msra.mxu0 %v928_v6  ;;  %v953_v28 = vld [vmem:[#allocation6 + $0xb4] ss:$8 sps:$4 sm:$0xff]   ;;  %v955_v29 = vld [vmem:[#allocation6 + $0xb0] ss:$8 sps:$4 sm:$0xff]   ;;  %v962_v34 = vld [vmem:[#allocation6 + $0xe4] ss:$8 sps:$4 sm:$0xff]   ;;  %p1082_p11 = scmp.lt.s32.totalorder %s733_s23, %s733_s23 }
  0x42   :  { %327 = vmatprep.subr.bf16.mxu0 %v929_v7  ;;  %v959_v32 = vld [vmem:[#allocation6 + $0xd4] ss:$8 sps:$4 sm:$0xff]   ;;  %v961_v33 = vld [vmem:[#allocation6 + $0xd0] ss:$8 sps:$4 sm:$0xff]   ;;  %v964_v35 = vld [vmem:[#allocation6 + $0xe0] ss:$8 sps:$4 sm:$0xff]  }
  0x43   :  { %821 = vmatpush3.bf16.msra.mxu1 %v1182_v21  ;;  %v965_v36 = vld [vmem:[#allocation6 + $0xf4] ss:$8 sps:$4 sm:$0xff]   ;;  %v967_v37 = vld [vmem:[#allocation6 + $0xf0] ss:$8 sps:$4 sm:$0xff]   ;;  %v971_v39 = vld [vmem:[#allocation3 + $0x14] ss:$8 sps:$4 sm:$0xff]  }
  0x44   :  { %822 = vmatprep.subr.bf16.mxu1 %v1112_v0  ;;  %v968_v38 = vld [vmem:[#allocation3] ss:$8 sps:$4 sm:$0xff]   ;;  %v973_v40 = vld [vmem:[#allocation3 + $0x10] ss:$8 sps:$4 sm:$0xff]   ;;  %v974_v41 = vld [vmem:[#allocation3 + $0x24] ss:$8 sps:$4 sm:$0xff]  }
  0x45   :  { %328 = vmatpush1.bf16.msra.mxu0 %v931_v8  ;;  %v976_v42 = vld [vmem:[#allocation3 + $0x20] ss:$8 sps:$4 sm:$0xff]   ;;  %v977_v43 = vld [vmem:[#allocation3 + $0x34] ss:$8 sps:$4 sm:$0xff]   ;;  %v979_v44 = vld [vmem:[#allocation3 + $0x30] ss:$8 sps:$4 sm:$0xff]  }
  0x46   :  { %329 = vmatprep.subr.bf16.mxu0 %v932_v9  ;;  %v980_v45 = vld [vmem:[#allocation3 + $0x44] ss:$8 sps:$4 sm:$0xff]   ;;  %v982_v46 = vld [vmem:[#allocation3 + $0x40] ss:$8 sps:$4 sm:$0xff]   ;;  %v1195_v47 = vld [vmem:[#allocation8 + $0x20] sm:$0xff]   ;;  %s1077_s24 = scalar_lea.vmem %s733_s23, 128 }
  0x47   :  { %823 = vmatpush3.bf16.msra.mxu1 %v1186_v23  ;;  %v1199_v48 = vld [vmem:[#allocation8 + $0x28] sm:$0xff]   ;;  %v1203_v49 = vld [vmem:[#allocation8 + $0x30] sm:$0xff]   ;;  %v1207_v50 = vld [vmem:[#allocation8 + $0x38] sm:$0xff]   ;;  %p1078_p10 = scmp.ne.s32.totalorder %s733_s23, %s1077_s24  ;;  %p1083_p12 = scmp.lt.s32.totalorder %s1077_s24, %s1077_s24 }
  0x48   :  { %824 = vmatprep.subr.bf16.mxu1 %v1112_v0 }
  0x49   :  { %330 = vmatpush1.bf16.msra.mxu0 %v934_v10  ;;  %p1084_p13 = por %p1083_p12, %p1082_p11 }
  0x4a   :  { %331 = vmatprep.subr.bf16.mxu0 %v935_v11 }
  0x4b   :  { %825 = vmatpush3.bf16.msra.mxu1 %v1190_v26  ;;  %p1085_p0 = pnand %p1084_p13, %p1078_p10 }
  0x4c   :  { %826 = vmatprep.subr.bf16.mxu1 %v1112_v0 }
  0x4d   :  { %332 = vmatpush1.bf16.msra.mxu0 %v937_v12 }
  0x4e   :  { %333 = vmatprep.subr.bf16.mxu0 %v938_v13 }
  0x4f   :  { %827 = vmatpush3.bf16.msra.mxu1 %v1195_v47 }
  0x50   :  { %828 = vmatprep.subr.bf16.mxu1 %v1112_v0 }
  0x51   :  { %334 = vmatpush1.bf16.msra.mxu0 %v940_v15 }
  0x52   :  { %335 = vmatprep.subr.bf16.mxu0 %v941_v16 }
  0x53   :  { %829 = vmatpush3.bf16.msra.mxu1 %v1199_v48 }
  0x54   :  { %830 = vmatprep.subr.bf16.mxu1 %v1112_v0 }
  0x55   :  { %336 = vmatpush1.bf16.msra.mxu0 %v943_v17 }
  0x56   :  { %337 = vmatprep.subr.bf16.mxu0 %v944_v18 }
  0x57   :  { %831 = vmatpush3.bf16.msra.mxu1 %v1203_v49 }
  0x58   :  { %832 = vmatprep.subr.bf16.mxu1 %v1112_v0 }
  0x59   :  { %338 = vmatpush1.bf16.msra.mxu0 %v946_v20 }
  0x5a   :  { %339 = vmatprep.subr.bf16.mxu0 %v947_v22 }
  0x5b   :  { %833 = vmatpush3.bf16.msra.mxu1 %v1207_v50 }
  0x5c   :  { %854 = vmatprep.subr.bf16.mxu1 %v1112_v0 }
  0x5d   :  { %340 = vmatpush1.bf16.msra.mxu0 %v949_v24 }
  0x5e   :  { %341 = vmatprep.subr.bf16.mxu0 %v950_v25 }
  0x61   :  { %342 = vmatpush1.bf16.msra.mxu0 %v952_v27 }
  0x62   :  { %343 = vmatprep.subr.bf16.mxu0 %v953_v28 }
  0x65   :  { %344 = vmatpush1.bf16.msra.mxu0 %v955_v29 }
  0x66   :  { %345 = vmatprep.subr.bf16.mxu0 %v956_v30 }
  0x69   :  { %346 = vmatpush1.bf16.msra.mxu0 %v958_v31 }
  0x6a   :  { %347 = vmatprep.subr.bf16.mxu0 %v959_v32 }
  0x6d   :  { %348 = vmatpush1.bf16.msra.mxu0 %v961_v33 }
  0x6e   :  { %349 = vmatprep.subr.bf16.mxu0 %v962_v34 }
  0x71   :  { %350 = vmatpush1.bf16.msra.mxu0 %v964_v35 }
  0x72   :  { %351 = vmatprep.subr.bf16.mxu0 %v965_v36 }
  0x75   :  { %352 = vmatpush1.bf16.msra.mxu0 %v967_v37 }
  0x78   :  { %354 = vmatmul.mubr.bf16.vlgmr.msra.gmra.mrb[0].mxu0 %v968_v38 }
  0x79   :  { %363 = vmatprep.mubr.bf16.mxu0 %v971_v39 }
  0x80   :  { %364 = vmatmul.mubr.bf16.gmra.mrb[4].mxu0 %v973_v40 }
  0x81   :  { %373 = vmatprep.mubr.bf16.mxu0 %v974_v41 }
  0x88   :  { %374 = vmatmul.mubr.bf16.gmra.mrb[8].mxu0 %v976_v42 }
  0x89   :  { %383 = vmatprep.mubr.bf16.mxu0 %v977_v43 }
  0x90   :  { %384 = vmatmul.mubr.bf16.gmra.mrb[12].mxu0 %v979_v44 }
  0x91   :  { %393 = vmatprep.mubr.bf16.mxu0 %v980_v45 }
  0x98   :  { %394 = vmatmul.mubr.bf16.gmra.mrb[16].mxu0 %v982_v46 }
 0x14b   :  { %v355_v51 = vpop.f32.mrb[0].mxu0 }
 0x14c   :  { %v404_v52 = vmul.f32 %v355_v51, %v355_v51  ;;  %v357_v53 = vpop.f32.mrb[1].mxu0 }
 0x14d   :  { %v414_v54 = vmul.f32 %v357_v53, %v357_v53  ;;  %v359_v55 = vpop.f32.mrb[2].mxu0 }
 0x14e   :  { %v405_v56 = vmul.f32 %v359_v55, %v359_v55  ;;  %v361_v57 = vpop.f32.mrb[3].mxu0 }
 0x14f   :  { %v424_v58 = vadd.f32 %v414_v54, %v404_v52  ;;  %v415_v59 = vmul.f32 %v361_v57, %v361_v57 }
 0x151   :  { %v425_v60 = vadd.f32 %v415_v59, %v405_v56 }
 0x153   :  { %v1213_v61 = vpack.c.bf16 %v425_v60, %v424_v58  ;;  %v365_v62 = vpop.f32.mrb[4].mxu0 }
 0x154   :  { %v406_v63 = vmul.f32 %v365_v62, %v365_v62  ;;  %v367_v1 = vpop.f32.mrb[5].mxu0 }
 0x155   :  { %v440_v2 = vunpack.c.h.bf16 %v1213_v61  ;;  %v416_v3 = vmul.f32 %v367_v1, %v367_v1  ;;  %v369_v4 = vpop.f32.mrb[6].mxu0  ;;  %v439_v5 = vunpack.c.l.bf16 %v1213_v61 }
 0x156   :  { %v407_v6 = vmul.f32 %v369_v4, %v369_v4  ;;  %v371_v7 = vpop.f32.mrb[7].mxu0 }
 0x157   :  { %v450_v8 = vsub.f32 %v425_v60, %v440_v2  ;;  %v426_v9 = vadd.f32 %v416_v3, %v406_v63  ;;  %v417_v10 = vmul.f32 %v371_v7, %v371_v7  ;;  %v449_v11 = vsub.f32 %v424_v58, %v439_v5 }
 0x159   :  { %v427_v12 = vadd.f32 %v417_v10, %v407_v6  ;;  %v459_v13 = vpack.c.bf16 %v450_v8, %v449_v11 }
 0x15b   :  { %v1217_v14 = vpack.c.bf16 %v427_v12, %v426_v9  ;;  %v375_v15 = vpop.f32.mrb[8].mxu0  ;;  %835 = vmatmul.mubr.bf16.vlgmr.msra.gmra.mrb[0].mxu1 %v459_v13 }
 0x15c   :  { %v408_v16 = vmul.f32 %v375_v15, %v375_v15  ;;  %855 = vmatpush3.bf16.msra.mxu1 %v1179_v19  ;;  %v377_v17 = vpop.f32.mrb[9].mxu0  ;;  %838 = vmatprep.mubr.msk.bf16.mxu1 %vm1113_vm0, %v1112_v0 }
 0x15d   :  { %v442_v18 = vunpack.c.h.bf16 %v1217_v14  ;;  %v418_v20 = vmul.f32 %v377_v17, %v377_v17  ;;  %v379_v22 = vpop.f32.mrb[10].mxu0  ;;  %856 = vmatprep.subr.bf16.mxu1 %v1112_v0  ;;  %v441_v24 = vunpack.c.l.bf16 %v1217_v14 }
 0x15e   :  { %v409_v25 = vmul.f32 %v379_v22, %v379_v22  ;;  %v381_v27 = vpop.f32.mrb[11].mxu0 }
 0x15f   :  { %v452_v28 = vsub.f32 %v427_v12, %v442_v18  ;;  %v428_v29 = vadd.f32 %v418_v20, %v408_v16  ;;  %v419_v30 = vmul.f32 %v381_v27, %v381_v27  ;;  %v451_v31 = vsub.f32 %v426_v9, %v441_v24 }
 0x160   :  { %857 = vmatpush3.bf16.msra.mxu1 %v1182_v21 }
 0x161   :  { %v429_v19 = vadd.f32 %v419_v30, %v409_v25  ;;  %v460_v32 = vpack.c.bf16 %v452_v28, %v451_v31  ;;  %858 = vmatprep.subr.bf16.mxu1 %v1112_v0 }
 0x163   :  { %v436_v33 = vpack.c.bf16 %v429_v19, %v428_v29  ;;  %v385_v34 = vpop.f32.mrb[12].mxu0  ;;  %839 = vmatmul.mubr.bf16.gmra.mrb[4].mxu1 %v460_v32 }
 0x164   :  { %v410_v35 = vmul.f32 %v385_v34, %v385_v34  ;;  %v387_v36 = vpop.f32.mrb[13].mxu0  ;;  %859 = vmatpush3.bf16.msra.mxu1 %v1186_v23  ;;  %842 = vmatprep.mubr.msk.bf16.mxu1 %vm1113_vm0, %v1112_v0 }
 0x165   :  { %v444_v37 = vunpack.c.h.bf16 %v436_v33  ;;  %v420_v38 = vmul.f32 %v387_v36, %v387_v36  ;;  %v389_v39 = vpop.f32.mrb[14].mxu0  ;;  %860 = vmatprep.subr.bf16.mxu1 %v1112_v0  ;;  %v443_v21 = vunpack.c.l.bf16 %v436_v33 }
 0x166   :  { %v411_v40 = vmul.f32 %v389_v39, %v389_v39  ;;  %v391_v41 = vpop.f32.mrb[15].mxu0 }
 0x167   :  { %v454_v42 = vsub.f32 %v429_v19, %v444_v37  ;;  %v430_v43 = vadd.f32 %v420_v38, %v410_v35  ;;  %v421_v44 = vmul.f32 %v391_v41, %v391_v41  ;;  %v453_v45 = vsub.f32 %v428_v29, %v443_v21 }
 0x168   :  { %861 = vmatpush3.bf16.msra.mxu1 %v1190_v26 }
 0x169   :  { %v431_v46 = vadd.f32 %v421_v44, %v411_v40  ;;  %v461_v51 = vpack.c.bf16 %v454_v42, %v453_v45  ;;  %862 = vmatprep.subr.bf16.mxu1 %v1112_v0 }
 0x16b   :  { %v437_v23 = vpack.c.bf16 %v431_v46, %v430_v43  ;;  %v395_v52 = vpop.f32.mrb[16].mxu0  ;;  %843 = vmatmul.mubr.bf16.gmra.mrb[8].mxu1 %v461_v51 }
 0x16c   :  { %v412_v53 = vmul.f32 %v395_v52, %v395_v52  ;;  %v397_v54 = vpop.f32.mrb[17].mxu0  ;;  %863 = vmatpush3.bf16.msra.mxu1 %v1195_v47  ;;  %846 = vmatprep.mubr.msk.bf16.mxu1 %vm1113_vm0, %v1112_v0 }
 0x16d   :  { %v446_v55 = vunpack.c.h.bf16 %v437_v23  ;;  %v422_v56 = vmul.f32 %v397_v54, %v397_v54  ;;  %v399_v57 = vpop.f32.mrb[18].mxu0  ;;  %v445_v58 = vunpack.c.l.bf16 %v437_v23  ;;  %864 = vmatprep.subr.bf16.mxu1 %v1112_v0 }
 0x16e   :  { %v413_v26 = vmul.f32 %v399_v57, %v399_v57  ;;  %v401_v59 = vpop.f32.mrb[19].mxu0 }
 0x16f   :  { %v456_v60 = vsub.f32 %v431_v46, %v446_v55  ;;  %v432_v62 = vadd.f32 %v422_v56, %v412_v53  ;;  %v423_v63 = vmul.f32 %v401_v59, %v401_v59  ;;  %v455_v1 = vsub.f32 %v430_v43, %v445_v58 }
 0x170   :  { %865 = vmatpush3.bf16.msra.mxu1 %v1199_v48 }
 0x171   :  { %v433_v2 = vadd.f32 %v423_v63, %v413_v26  ;;  %v462_v3 = vpack.c.bf16 %v456_v60, %v455_v1  ;;  %866 = vmatprep.subr.bf16.mxu1 %v1112_v0 }
 0x173   :  { %v438_v47 = vpack.c.bf16 %v433_v2, %v432_v62  ;;  %847 = vmatmul.mubr.bf16.gmra.mrb[12].mxu1 %v462_v3 }
 0x174   :  { %867 = vmatpush3.bf16.msra.mxu1 %v1203_v49  ;;  %850 = vmatprep.mubr.msk.bf16.mxu1 %vm1113_vm0, %v1112_v0 }
 0x175   :  { %v448_v4 = vunpack.c.h.bf16 %v438_v47  ;;  %v447_v5 = vunpack.c.l.bf16 %v438_v47  ;;  %868 = vmatprep.subr.bf16.mxu1 %v1112_v0 }
 0x177   :  { %v458_v6 = vsub.f32 %v433_v2, %v448_v4  ;;  %v457_v7 = vsub.f32 %v432_v62, %v447_v5 }
 0x178   :  { %869 = vmatpush3.bf16.msra.mxu1 %v1207_v50 }
 0x179   :  { %v463_v48 = vpack.c.bf16 %v458_v6, %v457_v7 }
 0x17b   :  { %851 = vmatmul.mubr.bf16.gmra.mrb[16].mxu1 %v463_v48 }
 0x17c   :  { %870 = vmatprep.mubr.msk.bf16.mxu1 %vm1113_vm0, %v1112_v0 }
 0x183   :  { %871 = vmatmul.mubr.bf16.vlgmr.msra.gmra.mrb[0].mxu1 %v1213_v61 }
 0x184   :  { %874 = vmatprep.mubr.msk.bf16.mxu1 %vm1113_vm0, %v1112_v0 }
 0x18b   :  { %875 = vmatmul.mubr.bf16.gmra.mrb[4].mxu1 %v1217_v14 }
 0x18c   :  { %878 = vmatprep.mubr.msk.bf16.mxu1 %vm1113_vm0, %v1112_v0 }
 0x193   :  { %879 = vmatmul.mubr.bf16.gmra.mrb[8].mxu1 %v436_v33 }
 0x194   :  { %882 = vmatprep.mubr.msk.bf16.mxu1 %vm1113_vm0, %v1112_v0 }
 0x19b   :  { %883 = vmatmul.mubr.bf16.gmra.mrb[12].mxu1 %v437_v23 }
 0x19c   :  { %886 = vmatprep.mubr.msk.bf16.mxu1 %vm1113_vm0, %v1112_v0 }
 0x1a3   :  { %887 = vmatmul.mubr.bf16.gmra.mrb[16].mxu1 %v438_v47 }
 0x256   :  { %v635_v49 = vpop.f32.mrb[0].mxu1 }
 0x257   :  { %v872_v50 = vpop.f32.mrb[1].mxu1  ;;  %v674_v13 = vmax.f32 %v635_v49, 1e-07 }
 0x258   :  { %v638_v61 = vpop.f32.mrb[2].mxu1 }
 0x259   :  { %v873_v8 = vpop.f32.mrb[3].mxu1  ;;  %991 = vlog2.f32 %v674_v13  ;;  %v675_v20 = vmax.f32 %v638_v61, 1e-07 }
 0x25e   :  { %v643_v9 = vpop.f32.mrb[4].mxu1 }
 0x25f   :  { %v876_v10 = vpop.f32.mrb[5].mxu1  ;;  %v676_v22 = vmax.f32 %v643_v9, 1e-07 }
 0x260   :  { %v646_v11 = vpop.f32.mrb[6].mxu1 }
 0x261   :  { %v877_v12 = vpop.f32.mrb[7].mxu1  ;;  %v677_v31 = vmax.f32 %v646_v11, 1e-07 }
 0x263   :  { %v992_v30 = vpop.eup %991 }
 0x264   :  { %v685_v33 = vmul.f32 0.6931472, %v992_v30 }
 0x266   :  { %v651_v14 = vpop.f32.mrb[8].mxu1 }
 0x267   :  { %v880_v15 = vpop.f32.mrb[9].mxu1  ;;  %v678_v19 = vmax.f32 %v651_v14, 1e-07 }
 0x268   :  { %v654_v16 = vpop.f32.mrb[10].mxu1 }
 0x269   :  { %v679_v17 = vmax.f32 %v654_v16, 1e-07  ;;  %v881_v18 = vpop.f32.mrb[11].mxu1 }
 0x26b   :  { %993 = vlog2.f32 %v679_v17 }
 0x26c   :  { %995 = vlog2.f32 %v675_v20 }
 0x26d   :  { %997 = vlog2.f32 %v676_v22 }
 0x26e   :  { %v659_v0 = vpop.f32.mrb[12].mxu1 }
 0x26f   :  { %v680_v24 = vmax.f32 %v659_v0, 1e-07  ;;  %v884_v25 = vpop.f32.mrb[13].mxu1 }
 0x270   :  { %v662_v27 = vpop.f32.mrb[14].mxu1 }
 0x271   :  { %999 = vlog2.f32 %v680_v24  ;;  %v681_v28 = vmax.f32 %v662_v27, 1e-07  ;;  %v885_v29 = vpop.f32.mrb[15].mxu1 }
 0x273   :  { %1001 = vlog2.f32 %v681_v28 }
 0x274   :  { %1003 = vlog2.f32 %v677_v31 }
 0x275   :  { %v994_v32 = vpop.eup %993  ;;  %1005 = vlog2.f32 %v678_v19 }
 0x276   :  { %v695_v34 = vmul.f32 0.6931472, %v994_v32  ;;  %v667_v35 = vpop.f32.mrb[16].mxu1  ;;  %v996_v21 = vpop.eup %995 }
 0x277   :  { %v682_v36 = vmax.f32 %v667_v35, 1e-07  ;;  %v888_v37 = vpop.f32.mrb[17].mxu1  ;;  %v998_v42 = vpop.eup %997  ;;  %v687_v44 = vmul.f32 0.6931472, %v996_v21 }
 0x278   :  { %v704_v38 = vsub.f32 %v685_v33, %v695_v34  ;;  %v670_v39 = vpop.f32.mrb[18].mxu1  ;;  %v689_v51 = vmul.f32 0.6931472, %v998_v42 }
 0x279   :  { %1007 = vlog2.f32 %v682_v36  ;;  %v683_v40 = vmax.f32 %v670_v39, 1e-07  ;;  %v889_v41 = vpop.f32.mrb[19].mxu1 }
 0x27a   :  { %v709_v53 = vand.u32 2147483647, %v704_v38 }
 0x27b   :  { %v1000_v43 = vpop.eup %999  ;;  %1009 = vlog2.f32 %v683_v40 }
 0x27c   :  { %v697_v45 = vmul.f32 0.6931472, %v1000_v43 }
 0x27d   :  { %v1002_v46 = vpop.eup %1001 }
 0x27e   :  { %v705_v23 = vsub.f32 %v687_v44, %v697_v45  ;;  %v699_v52 = vmul.f32 0.6931472, %v1002_v46  ;;  %v1004_v56 = vpop.eup %1003 }
 0x27f   :  { %v1006_v57 = vpop.eup %1005  ;;  %v691_v60 = vmul.f32 0.6931472, %v1004_v56 }
 0x280   :  { %v710_v54 = vand.u32 2147483647, %v705_v23  ;;  %v706_v55 = vsub.f32 %v689_v51, %v699_v52  ;;  %v693_v2 = vmul.f32 0.6931472, %v1006_v57 }
 0x282   :  { %v715_v58 = vadd.f32 %v710_v54, %v709_v53  ;;  %v711_v26 = vand.u32 2147483647, %v706_v55 }
 0x283   :  { %v1008_v59 = vpop.eup %1007 }
 0x284   :  { %v701_v62 = vmul.f32 0.6931472, %v1008_v59  ;;  %v716_v63 = vadd.f32 %v715_v58, %v711_v26 }
 0x285   :  { %v1010_v1 = vpop.eup %1009 }
 0x286   :  { %v707_v3 = vsub.f32 %v691_v60, %v701_v62  ;;  %v703_v47 = vmul.f32 0.6931472, %v1010_v1 }
 0x288   :  { %v712_v4 = vand.u32 2147483647, %v707_v3  ;;  %v708_v5 = vsub.f32 %v693_v2, %v703_v47 }
 0x28a   :  { %v713_v6 = vand.u32 2147483647, %v708_v5  ;;  %v717_v7 = vadd.f32 %v716_v63, %v712_v4 }
 0x28c   :  { %v718_v48 = vadd.f32 %v717_v7, %v713_v6 }
 0x28e   :  { %725 = vst [vmem:[#allocation9] sm:$0xff] %v718_v48 }
 0x28f   :  { %1088 = shalt.err (!%p1085_p0)
}
 0x290   :  { %s1089_s27 = scalar_lea.hbm %s1271_s3, 128 }
 0x291   :  { %p1090_p1 = scmp.ne.s32.totalorder %s1271_s3, %s1089_s27  ;;  %p1093_p2 = scmp.lt.u32.totalorder %s1089_s27, %s1271_s3 }
 0x293   :  { %p1095_p3 = pnand %p1093_p2, %p1090_p1 }
 0x295   :  { %1098 = shalt.err (!%p1095_p3)
}
 0x296   :  { %735 = dma.vmem_to_hbm [thread:$0]  %s733_s23, 128, %s1271_s3, [#allocation5]  }
 0x297   :  { %1103 = dma.done.wait [#allocation5], 128  }
 0x298   :  { %1104 = vsyncadd [#allocation5], 4294967168 }
 0x299   :  { %739 = vsyncpa [#allocation4], 1 }
 0x29a   :  { %740 = vsyncpa [#allocation7], 1 }
 0x29b   :  { %741 = vsyncpa [#allocation5], 1 }

</bundles_post_ra>
